<compile_context>
chip_gen: v7x
topology: tpu7x:2x2x1
jax: 0.10.0
libtpu: 0.0.40
codegen_flags: <defaults>
</compile_context>

<pallas_src>
import functools

import jax
import jax.numpy as jnp
from jax.experimental import pallas as pl
from jax.experimental.pallas import tpu as pltpu


# ----------------------------------------------------------------------------
# Fused forward kernel (whole model in one pallas_call)
# ----------------------------------------------------------------------------
def _onehot_eq(vals, shape, dim):
    """One-hot matrix via integer compare against an iota (VPU, no gather)."""
    iota = jax.lax.broadcasted_iota(jnp.int32, shape, dim)
    return jnp.where(vals == iota, 1.0, 0.0).astype(jnp.float32)


def _fused_forward_kernel(x_ids_ref, src_ref, dst_ref, etype_ref, ebatch_ref,
                          embed_ref, ilw_ref, ilb_ref, qpw_ref, qpb_ref,
                          qemb_ref, *rest):
    """rest = [w_root, w_rel, bias, attn_w, attn_b] * num_layers + [o_ref]."""
    o_ref = rest[-1]
    layer_refs = rest[:-1]
    num_layers = len(layer_refs) // 5

    f32 = jnp.float32
    n_nodes = x_ids_ref.shape[0]
    n_ent = embed_ref.shape[0]
    n_edges = src_ref.shape[0]
    n_rel = layer_refs[1].shape[0]          # w_rel: (R, K, D)
    n_batch = qemb_ref.shape[0]

    # ---- embedding gather as a one-hot matmul (no XLA gather) --------------
    ids_oh = _onehot_eq(x_ids_ref[...], (n_nodes, n_ent), 1)        # (N, NE)
    h = jnp.dot(ids_oh, embed_ref[...], preferred_element_type=f32)  # (N, F)

    # ---- input Linear (transform_input=True) -------------------------------
    h = jnp.dot(h, ilw_ref[...], preferred_element_type=f32) + ilb_ref[...]

    # ---- query projection (transform_query=True) ---------------------------
    q = (jnp.dot(qemb_ref[...], qpw_ref[...], preferred_element_type=f32)
         + qpb_ref[...])                                             # (B, Q)

    # ---- edge one-hots shared by all layers (replaces the XLA scatter) -----
    src_oh = _onehot_eq(src_ref[...], (n_edges, n_nodes), 1)         # (E, N)
    dst_oh_t = _onehot_eq(dst_ref[...], (n_nodes, n_edges), 0)       # (N, E)
    rel_oh = _onehot_eq(etype_ref[...], (n_edges, n_rel), 1)         # (E, R)
    batch_oh = _onehot_eq(ebatch_ref[...], (n_edges, n_batch), 1)    # (E, B)

    # total in-degree mean normalization (see TODO at top of file).
    deg = jnp.sum(dst_oh_t, axis=1, keepdims=True)                   # (N, 1)
    inv_deg = 1.0 / jnp.maximum(deg, 1.0)                            # (N, 1)

    for layer in range(num_layers):
        (w_root_ref, w_rel_ref, b_ref, aw_ref, ab_ref) = \
            layer_refs[5 * layer:5 * layer + 5]

        # per-(batch, relation) sigmoid attention -> per-edge weights.
        logits = (jnp.dot(q, aw_ref[...], preferred_element_type=f32)
                  + ab_ref[...])                                     # (B, R)
        alpha_tab = 1.0 / (1.0 + jnp.exp(-logits))                   # sigmoid
        # m[e, r] = alpha(batch_e, r) if type_e == r else 0
        m = jnp.dot(batch_oh, alpha_tab, preferred_element_type=f32) * rel_oh

        # gather source-node features once per layer (MXU gather).
        gathered = jnp.dot(src_oh, h, preferred_element_type=f32)    # (E, K)

        # root transform + bias.
        out = (jnp.dot(h, w_root_ref[...], preferred_element_type=f32)
               + b_ref[...])                                         # (N, D)

        # attention-weighted scatter-add per relation (MXU), then relation
        # transform; w_rel_ref[r] is a sublane-aligned leading-dim load.
        agg = None
        for r in range(n_rel):
            weighted = m[:, r:r + 1] * gathered                      # (E, K)
            agg_r = jnp.dot(dst_oh_t, weighted,
                            preferred_element_type=f32)              # (N, K)
            term = jnp.dot(agg_r, w_rel_ref[r],
                           preferred_element_type=f32)               # (N, D)
            agg = term if agg is None else agg + term
        out = out + inv_deg * agg

        # ReLU after every layer except the last (matches the reference: ReLU
        # always follows input_conv, and all but the last extra conv layer).
        if layer == 0 or layer != num_layers - 1:
            out = jnp.maximum(out, 0.0)
        h = out

    o_ref[...] = h.astype(o_ref.dtype)


def query_aware_rgcn_forward(params, x_ids, edge_index, edge_type, query_emb,
                             x_batch, edge_batch):
    """Full QueryAwareRGCN forward in a single fused pallas_call.

    x_batch is accepted for interface parity; as in the reference conv the
    per-edge query assignment uses edge_batch.
    """
    del x_batch  # unused: attention is selected per edge via edge_batch
    num_nodes = int(x_ids.shape[0])
    num_edges = int(edge_type.shape[0])
    gcn_dim = int(params["conv_layers"][0]["w_root"].shape[1])

    inputs = [
        x_ids.reshape(num_nodes, 1).astype(jnp.int32),
        edge_index[0].reshape(num_edges, 1).astype(jnp.int32),      # src
        edge_index[1].reshape(1, num_edges).astype(jnp.int32),      # dst row
        edge_type.reshape(num_edges, 1).astype(jnp.int32),
        edge_batch.reshape(num_edges, 1).astype(jnp.int32),
        params["embed"],
        params["input_lin_w"],
        params["input_lin_b"].reshape(1, -1),
        params["query_proj_w"],
        params["query_proj_b"].reshape(1, -1),
        query_emb,
    ]
    for lp in params["conv_layers"]:
        inputs += [lp["w_root"], lp["w_rel"], lp["bias"].reshape(1, -1),
                   lp["attn_w"], lp["attn_b"].reshape(1, -1)]

    def _fullblock(a):
        zeros = (0,) * a.ndim
        return pl.BlockSpec(a.shape, lambda zeros=zeros: zeros)

    return pl.pallas_call(
        _fused_forward_kernel,
        out_shape=jax.ShapeDtypeStruct((num_nodes, gcn_dim), jnp.float32),
        in_specs=[_fullblock(a) for a in inputs],
        out_specs=pl.BlockSpec((num_nodes, gcn_dim), lambda: (0, 0)),
        compiler_params=pltpu.CompilerParams(
            vmem_limit_bytes=32 * 1024 * 1024),
    )(*inputs)


# ----------------------------------------------------------------------------
# Pure-JAX reference (scatter/gather based) for validation
# ----------------------------------------------------------------------------
def reference_forward(params, x_ids, edge_index, edge_type, query_emb,
                      x_batch, edge_batch):
    del x_batch
    h = params["embed"][x_ids]
    h = h @ params["input_lin_w"] + params["input_lin_b"]
    q = query_emb @ params["query_proj_w"] + params["query_proj_b"]
    src, dst = edge_index[0], edge_index[1]
    n = h.shape[0]
    deg = jnp.zeros((n,), jnp.float32).at[dst].add(1.0)
    inv_deg = 1.0 / jnp.maximum(deg, 1.0)
    num_layers = len(params["conv_layers"])
    for i, lp in enumerate(params["conv_layers"]):
        alpha_tab = jax.nn.sigmoid(q @ lp["attn_w"] + lp["attn_b"])   # (B, R)
        alpha_e = alpha_tab[edge_batch, edge_type]                    # (E,)
        msg = alpha_e[:, None] * jnp.einsum(
            "ek,ekd->ed", h[src], lp["w_rel"][edge_type])             # (E, D)
        agg = jnp.zeros((n, lp["w_root"].shape[1]),
                        jnp.float32).at[dst].add(msg)
        out = h @ lp["w_root"] + lp["bias"] + inv_deg[:, None] * agg
        if i == 0 or i != num_layers - 1:
            out = jax.nn.relu(out)
        h = out
    return h


# ----------------------------------------------------------------------------
# Deterministic parameter construction
# ----------------------------------------------------------------------------
def make_conv_params(key, in_ch, out_ch, num_rel, q_dim):
    k = jax.random.split(key, 5)
    s = 1.0 / jnp.sqrt(jnp.float32(in_ch))
    return {
        "w_rel": jax.random.normal(k[0], (num_rel, in_ch, out_ch),
                                   jnp.float32) * s,
        "w_root": jax.random.normal(k[1], (in_ch, out_ch), jnp.float32) * s,
        "bias": jax.random.normal(k[2], (out_ch,), jnp.float32) * 0.01,
        "attn_w": jax.random.normal(k[3], (q_dim, num_rel), jnp.float32)
                  / jnp.sqrt(jnp.float32(q_dim)),
        "attn_b": jax.random.normal(k[4], (num_rel,), jnp.float32) * 0.01,
    }


def make_params(key, *, num_entities, feat_dim, gcn_dim, query_dim,
                query_proj_dim, num_relations, num_gcn_layers):
    keys = jax.random.split(key, 5 + num_gcn_layers)
    return {
        "embed": jax.random.normal(keys[0], (num_entities, feat_dim),
                                   jnp.float32),
        "input_lin_w": jax.random.normal(keys[1], (feat_dim, gcn_dim),
                                         jnp.float32)
                       / jnp.sqrt(jnp.float32(feat_dim)),
        "input_lin_b": jax.random.normal(keys[2], (gcn_dim,),
                                         jnp.float32) * 0.01,
        "query_proj_w": jax.random.normal(keys[3],
                                          (query_dim, query_proj_dim),
                                          jnp.float32)
                        / jnp.sqrt(jnp.float32(query_dim)),
        "query_proj_b": jax.random.normal(keys[4], (query_proj_dim,),
                                          jnp.float32) * 0.01,
        "conv_layers": [
            make_conv_params(keys[5 + i], gcn_dim, gcn_dim, num_relations,
                             query_proj_dim)
            for i in range(num_gcn_layers)
        ],
    }


# ----------------------------------------------------------------------------
# Main
# ----------------------------------------------------------------------------
if __name__ == "__main__":
    NUM_ENTITIES = 50
    FEAT_DIM = 32          # dense_node_feat_dim
    GCN_DIM = 32
    QUERY_DIM = 16
    QUERY_PROJ_DIM = 32
    NUM_RELATIONS = 4
    NUM_GCN_LAYERS = 2

    N_NODES = 16
    N_EDGES = 32
    BATCH = 2

    root = jax.random.PRNGKey(0)
    k_param, k_x, k_src, k_dst, k_et, k_q, k_xb, k_eb = jax.random.split(root, 8)

    params = make_params(
        k_param,
        num_entities=NUM_ENTITIES, feat_dim=FEAT_DIM, gcn_dim=GCN_DIM,
        query_dim=QUERY_DIM, query_proj_dim=QUERY_PROJ_DIM,
        num_relations=NUM_RELATIONS, num_gcn_layers=NUM_GCN_LAYERS,
    )

    x_ids = jax.random.randint(k_x, (N_NODES,), 0, NUM_ENTITIES, jnp.int32)
    src = jax.random.randint(k_src, (N_EDGES,), 0, N_NODES, jnp.int32)
    dst = jax.random.randint(k_dst, (N_EDGES,), 0, N_NODES, jnp.int32)
    edge_index = jnp.stack([src, dst], axis=0)
    edge_type = jax.random.randint(k_et, (N_EDGES,), 0, NUM_RELATIONS, jnp.int32)
    query_emb = jax.random.normal(k_q, (BATCH, QUERY_DIM), jnp.float32)
    x_batch = jax.random.randint(k_xb, (N_NODES,), 0, BATCH, jnp.int32)
    edge_batch = jax.random.randint(k_eb, (N_EDGES,), 0, BATCH, jnp.int32)

    fwd = jax.jit(functools.partial(query_aware_rgcn_forward, params))
    out = jax.block_until_ready(
        fwd(x_ids, edge_index, edge_type, query_emb, x_batch, edge_batch))

    ref = reference_forward(params, x_ids, edge_index, edge_type, query_emb,
                            x_batch, edge_batch)

    assert out.shape == (N_NODES, GCN_DIM)
    assert jnp.isfinite(out).all()
    assert jnp.allclose(out, ref, rtol=2e-3, atol=2e-3), float(
        jnp.max(jnp.abs(out - ref)))
    print("KERNEL_OK")
</pallas_src>

<mosaic_0001>
module attributes {stable_mosaic.version = 11 : i64} {
  func.func @_fused_forward_kernel(%arg0: memref<16x1xi32, #tpu.memory_space<vmem>>, %arg1: memref<32x1xi32, #tpu.memory_space<vmem>>, %arg2: memref<1x32xi32, #tpu.memory_space<vmem>>, %arg3: memref<32x1xi32, #tpu.memory_space<vmem>>, %arg4: memref<32x1xi32, #tpu.memory_space<vmem>>, %arg5: memref<50x32xf32, #tpu.memory_space<vmem>>, %arg6: memref<32x32xf32, #tpu.memory_space<vmem>>, %arg7: memref<1x32xf32, #tpu.memory_space<vmem>>, %arg8: memref<16x32xf32, #tpu.memory_space<vmem>>, %arg9: memref<1x32xf32, #tpu.memory_space<vmem>>, %arg10: memref<2x16xf32, #tpu.memory_space<vmem>>, %arg11: memref<32x32xf32, #tpu.memory_space<vmem>>, %arg12: memref<4x32x32xf32, #tpu.memory_space<vmem>>, %arg13: memref<1x32xf32, #tpu.memory_space<vmem>>, %arg14: memref<32x4xf32, #tpu.memory_space<vmem>>, %arg15: memref<1x4xf32, #tpu.memory_space<vmem>>, %arg16: memref<32x32xf32, #tpu.memory_space<vmem>>, %arg17: memref<4x32x32xf32, #tpu.memory_space<vmem>>, %arg18: memref<1x32xf32, #tpu.memory_space<vmem>>, %arg19: memref<32x4xf32, #tpu.memory_space<vmem>>, %arg20: memref<1x4xf32, #tpu.memory_space<vmem>>, %arg21: memref<16x32xf32, #tpu.memory_space<vmem>>) attributes {dimension_semantics = [], scalar_prefetch = 0 : i64, scratch_operands = 0 : i64, tpu.core_type = #tpu.core_type<tc>} {
    %c0 = arith.constant 0 : index
    %c0_0 = arith.constant 0 : index
    %0 = vector.load %arg0[%c0, %c0_0] : memref<16x1xi32, #tpu.memory_space<vmem>>, vector<16x1xi32>
    %1 = tpu.iota {dimensions = array<i32: 1>} : vector<16x50xi32>
    %2 = vector.broadcast %0 : vector<16x1xi32> to vector<16x50xi32>
    %3 = arith.cmpi eq, %2, %1 : vector<16x50xi32>
    %cst = arith.constant 1.000000e+00 : f32
    %cst_1 = arith.constant 0.000000e+00 : f32
    %4 = vector.broadcast %cst : f32 to vector<16x50xf32>
    %5 = vector.broadcast %cst_1 : f32 to vector<16x50xf32>
    %6 = arith.select %3, %4, %5 : vector<16x50xi1>, vector<16x50xf32>
    %c0_2 = arith.constant 0 : index
    %c0_3 = arith.constant 0 : index
    %7 = vector.load %arg5[%c0_2, %c0_3] : memref<50x32xf32, #tpu.memory_space<vmem>>, vector<50x32xf32>
    %cst_4 = arith.constant dense<0.000000e+00> : vector<16x32xf32>
    %8 = tpu.matmul %6, %7, %cst_4 {dimension_numbers = #tpu.dot_dimension_numbers<[1], [0], [0], [1], [0, 0, 1, 1], [], []>} : vector<16x50xf32>, vector<50x32xf32>, vector<16x32xf32> -> vector<16x32xf32>
    %c0_5 = arith.constant 0 : index
    %c0_6 = arith.constant 0 : index
    %9 = vector.load %arg6[%c0_5, %c0_6] : memref<32x32xf32, #tpu.memory_space<vmem>>, vector<32x32xf32>
    %cst_7 = arith.constant dense<0.000000e+00> : vector<16x32xf32>
    %10 = tpu.matmul %8, %9, %cst_7 {dimension_numbers = #tpu.dot_dimension_numbers<[1], [0], [0], [1], [0, 0, 1, 1], [], []>} : vector<16x32xf32>, vector<32x32xf32>, vector<16x32xf32> -> vector<16x32xf32>
    %c0_8 = arith.constant 0 : index
    %c0_9 = arith.constant 0 : index
    %11 = vector.load %arg7[%c0_8, %c0_9] : memref<1x32xf32, #tpu.memory_space<vmem>>, vector<1x32xf32>
    %12 = vector.broadcast %11 : vector<1x32xf32> to vector<16x32xf32>
    %13 = arith.addf %10, %12 : vector<16x32xf32>
    %c0_10 = arith.constant 0 : index
    %c0_11 = arith.constant 0 : index
    %14 = vector.load %arg10[%c0_10, %c0_11] : memref<2x16xf32, #tpu.memory_space<vmem>>, vector<2x16xf32>
    %c0_12 = arith.constant 0 : index
    %c0_13 = arith.constant 0 : index
    %15 = vector.load %arg8[%c0_12, %c0_13] : memref<16x32xf32, #tpu.memory_space<vmem>>, vector<16x32xf32>
    %cst_14 = arith.constant dense<0.000000e+00> : vector<2x32xf32>
    %16 = tpu.matmul %14, %15, %cst_14 {dimension_numbers = #tpu.dot_dimension_numbers<[1], [0], [0], [1], [0, 0, 1, 1], [], []>} : vector<2x16xf32>, vector<16x32xf32>, vector<2x32xf32> -> vector<2x32xf32>
    %c0_15 = arith.constant 0 : index
    %c0_16 = arith.constant 0 : index
    %17 = vector.load %arg9[%c0_15, %c0_16] : memref<1x32xf32, #tpu.memory_space<vmem>>, vector<1x32xf32>
    %18 = vector.broadcast %17 : vector<1x32xf32> to vector<2x32xf32>
    %19 = arith.addf %16, %18 : vector<2x32xf32>
    %c0_17 = arith.constant 0 : index
    %c0_18 = arith.constant 0 : index
    %20 = vector.load %arg1[%c0_17, %c0_18] : memref<32x1xi32, #tpu.memory_space<vmem>>, vector<32x1xi32>
    %21 = tpu.iota {dimensions = array<i32: 1>} : vector<32x16xi32>
    %22 = vector.broadcast %20 : vector<32x1xi32> to vector<32x16xi32>
    %23 = arith.cmpi eq, %22, %21 : vector<32x16xi32>
    %cst_19 = arith.constant 1.000000e+00 : f32
    %cst_20 = arith.constant 0.000000e+00 : f32
    %24 = vector.broadcast %cst_19 : f32 to vector<32x16xf32>
    %25 = vector.broadcast %cst_20 : f32 to vector<32x16xf32>
    %26 = arith.select %23, %24, %25 : vector<32x16xi1>, vector<32x16xf32>
    %c0_21 = arith.constant 0 : index
    %c0_22 = arith.constant 0 : index
    %27 = vector.load %arg2[%c0_21, %c0_22] : memref<1x32xi32, #tpu.memory_space<vmem>>, vector<1x32xi32>
    %28 = tpu.iota {dimensions = array<i32: 0>} : vector<16x32xi32>
    %29 = vector.broadcast %27 : vector<1x32xi32> to vector<16x32xi32>
    %30 = arith.cmpi eq, %29, %28 : vector<16x32xi32>
    %cst_23 = arith.constant 1.000000e+00 : f32
    %cst_24 = arith.constant 0.000000e+00 : f32
    %31 = vector.broadcast %cst_23 : f32 to vector<16x32xf32>
    %32 = vector.broadcast %cst_24 : f32 to vector<16x32xf32>
    %33 = arith.select %30, %31, %32 : vector<16x32xi1>, vector<16x32xf32>
    %c0_25 = arith.constant 0 : index
    %c0_26 = arith.constant 0 : index
    %34 = vector.load %arg3[%c0_25, %c0_26] : memref<32x1xi32, #tpu.memory_space<vmem>>, vector<32x1xi32>
    %35 = tpu.iota {dimensions = array<i32: 1>} : vector<32x4xi32>
    %36 = vector.broadcast %34 : vector<32x1xi32> to vector<32x4xi32>
    %37 = arith.cmpi eq, %36, %35 : vector<32x4xi32>
    %cst_27 = arith.constant 1.000000e+00 : f32
    %cst_28 = arith.constant 0.000000e+00 : f32
    %38 = vector.broadcast %cst_27 : f32 to vector<32x4xf32>
    %39 = vector.broadcast %cst_28 : f32 to vector<32x4xf32>
    %40 = arith.select %37, %38, %39 : vector<32x4xi1>, vector<32x4xf32>
    %c0_29 = arith.constant 0 : index
    %c0_30 = arith.constant 0 : index
    %41 = vector.load %arg4[%c0_29, %c0_30] : memref<32x1xi32, #tpu.memory_space<vmem>>, vector<32x1xi32>
    %42 = tpu.iota {dimensions = array<i32: 1>} : vector<32x2xi32>
    %43 = vector.broadcast %41 : vector<32x1xi32> to vector<32x2xi32>
    %44 = arith.cmpi eq, %43, %42 : vector<32x2xi32>
    %cst_31 = arith.constant 1.000000e+00 : f32
    %cst_32 = arith.constant 0.000000e+00 : f32
    %45 = vector.broadcast %cst_31 : f32 to vector<32x2xf32>
    %46 = vector.broadcast %cst_32 : f32 to vector<32x2xf32>
    %47 = arith.select %44, %45, %46 : vector<32x2xi1>, vector<32x2xf32>
    %cst_33 = arith.constant dense<0.000000e+00> : vector<16xf32>
    %48 = vector.multi_reduction <add>, %33, %cst_33 [1] : vector<16x32xf32> to vector<16xf32>
    %49 = vector.shape_cast %48 : vector<16xf32> to vector<16x1xf32>
    %cst_34 = arith.constant 1.000000e+00 : f32
    %50 = vector.broadcast %cst_34 : f32 to vector<16x1xf32>
    %51 = arith.maximumf %49, %50 : vector<16x1xf32>
    %cst_35 = arith.constant 1.000000e+00 : f32
    %52 = vector.broadcast %cst_35 : f32 to vector<16x1xf32>
    %53 = arith.divf %52, %51 : vector<16x1xf32>
    %c0_36 = arith.constant 0 : index
    %c0_37 = arith.constant 0 : index
    %54 = vector.load %arg14[%c0_36, %c0_37] : memref<32x4xf32, #tpu.memory_space<vmem>>, vector<32x4xf32>
    %cst_38 = arith.constant dense<0.000000e+00> : vector<2x4xf32>
    %55 = tpu.matmul %19, %54, %cst_38 {dimension_numbers = #tpu.dot_dimension_numbers<[1], [0], [0], [1], [0, 0, 1, 1], [], []>} : vector<2x32xf32>, vector<32x4xf32>, vector<2x4xf32> -> vector<2x4xf32>
    %c0_39 = arith.constant 0 : index
    %c0_40 = arith.constant 0 : index
    %56 = vector.load %arg15[%c0_39, %c0_40] : memref<1x4xf32, #tpu.memory_space<vmem>>, vector<1x4xf32>
    %57 = vector.broadcast %56 : vector<1x4xf32> to vector<2x4xf32>
    %58 = arith.addf %55, %57 : vector<2x4xf32>
    %cst_41 = arith.constant 0.000000e+00 : f32
    %59 = vector.broadcast %cst_41 : f32 to vector<2x4xf32>
    %60 = arith.subf %59, %58 : vector<2x4xf32>
    %61 = math.exp %60 : vector<2x4xf32>
    %cst_42 = arith.constant 1.000000e+00 : f32
    %62 = vector.broadcast %cst_42 : f32 to vector<2x4xf32>
    %63 = arith.addf %62, %61 : vector<2x4xf32>
    %cst_43 = arith.constant 1.000000e+00 : f32
    %64 = vector.broadcast %cst_43 : f32 to vector<2x4xf32>
    %65 = arith.divf %64, %63 : vector<2x4xf32>
    %cst_44 = arith.constant dense<0.000000e+00> : vector<32x4xf32>
    %66 = tpu.matmul %47, %65, %cst_44 {dimension_numbers = #tpu.dot_dimension_numbers<[1], [0], [0], [1], [0, 0, 1, 1], [], []>} : vector<32x2xf32>, vector<2x4xf32>, vector<32x4xf32> -> vector<32x4xf32>
    %67 = arith.mulf %66, %40 : vector<32x4xf32>
    %cst_45 = arith.constant dense<0.000000e+00> : vector<32x32xf32>
    %68 = tpu.matmul %26, %13, %cst_45 {dimension_numbers = #tpu.dot_dimension_numbers<[1], [0], [0], [1], [0, 0, 1, 1], [], []>} : vector<32x16xf32>, vector<16x32xf32>, vector<32x32xf32> -> vector<32x32xf32>
    %c0_46 = arith.constant 0 : index
    %c0_47 = arith.constant 0 : index
    %69 = vector.load %arg11[%c0_46, %c0_47] : memref<32x32xf32, #tpu.memory_space<vmem>>, vector<32x32xf32>
    %cst_48 = arith.constant dense<0.000000e+00> : vector<16x32xf32>
    %70 = tpu.matmul %13, %69, %cst_48 {dimension_numbers = #tpu.dot_dimension_numbers<[1], [0], [0], [1], [0, 0, 1, 1], [], []>} : vector<16x32xf32>, vector<32x32xf32>, vector<16x32xf32> -> vector<16x32xf32>
    %c0_49 = arith.constant 0 : index
    %c0_50 = arith.constant 0 : index
    %71 = vector.load %arg13[%c0_49, %c0_50] : memref<1x32xf32, #tpu.memory_space<vmem>>, vector<1x32xf32>
    %72 = vector.broadcast %71 : vector<1x32xf32> to vector<16x32xf32>
    %73 = arith.addf %70, %72 : vector<16x32xf32>
    %74 = vector.extract_strided_slice %67 {offsets = [0, 0], sizes = [32, 1], strides = [1, 1]} : vector<32x4xf32> to vector<32x1xf32>
    %75 = vector.broadcast %74 : vector<32x1xf32> to vector<32x32xf32>
    %76 = arith.mulf %75, %68 : vector<32x32xf32>
    %cst_51 = arith.constant dense<0.000000e+00> : vector<16x32xf32>
    %77 = tpu.matmul %33, %76, %cst_51 {dimension_numbers = #tpu.dot_dimension_numbers<[1], [0], [0], [1], [0, 0, 1, 1], [], []>} : vector<16x32xf32>, vector<32x32xf32>, vector<16x32xf32> -> vector<16x32xf32>
    %c0_52 = arith.constant 0 : index
    %c0_53 = arith.constant 0 : index
    %c0_54 = arith.constant 0 : index
    %78 = vector.load %arg12[%c0_52, %c0_53, %c0_54] : memref<4x32x32xf32, #tpu.memory_space<vmem>>, vector<1x32x32xf32>
    %79 = vector.shape_cast %78 : vector<1x32x32xf32> to vector<32x32xf32>
    %cst_55 = arith.constant dense<0.000000e+00> : vector<16x32xf32>
    %80 = tpu.matmul %77, %79, %cst_55 {dimension_numbers = #tpu.dot_dimension_numbers<[1], [0], [0], [1], [0, 0, 1, 1], [], []>} : vector<16x32xf32>, vector<32x32xf32>, vector<16x32xf32> -> vector<16x32xf32>
    %81 = vector.extract_strided_slice %67 {offsets = [0, 1], sizes = [32, 1], strides = [1, 1]} : vector<32x4xf32> to vector<32x1xf32>
    %82 = vector.broadcast %81 : vector<32x1xf32> to vector<32x32xf32>
    %83 = arith.mulf %82, %68 : vector<32x32xf32>
    %cst_56 = arith.constant dense<0.000000e+00> : vector<16x32xf32>
    %84 = tpu.matmul %33, %83, %cst_56 {dimension_numbers = #tpu.dot_dimension_numbers<[1], [0], [0], [1], [0, 0, 1, 1], [], []>} : vector<16x32xf32>, vector<32x32xf32>, vector<16x32xf32> -> vector<16x32xf32>
    %c1 = arith.constant 1 : index
    %c0_57 = arith.constant 0 : index
    %c0_58 = arith.constant 0 : index
    %85 = vector.load %arg12[%c1, %c0_57, %c0_58] : memref<4x32x32xf32, #tpu.memory_space<vmem>>, vector<1x32x32xf32>
    %86 = vector.shape_cast %85 : vector<1x32x32xf32> to vector<32x32xf32>
    %cst_59 = arith.constant dense<0.000000e+00> : vector<16x32xf32>
    %87 = tpu.matmul %84, %86, %cst_59 {dimension_numbers = #tpu.dot_dimension_numbers<[1], [0], [0], [1], [0, 0, 1, 1], [], []>} : vector<16x32xf32>, vector<32x32xf32>, vector<16x32xf32> -> vector<16x32xf32>
    %88 = arith.addf %80, %87 : vector<16x32xf32>
    %89 = vector.extract_strided_slice %67 {offsets = [0, 2], sizes = [32, 1], strides = [1, 1]} : vector<32x4xf32> to vector<32x1xf32>
    %90 = vector.broadcast %89 : vector<32x1xf32> to vector<32x32xf32>
    %91 = arith.mulf %90, %68 : vector<32x32xf32>
    %cst_60 = arith.constant dense<0.000000e+00> : vector<16x32xf32>
    %92 = tpu.matmul %33, %91, %cst_60 {dimension_numbers = #tpu.dot_dimension_numbers<[1], [0], [0], [1], [0, 0, 1, 1], [], []>} : vector<16x32xf32>, vector<32x32xf32>, vector<16x32xf32> -> vector<16x32xf32>
    %c2 = arith.constant 2 : index
    %c0_61 = arith.constant 0 : index
    %c0_62 = arith.constant 0 : index
    %93 = vector.load %arg12[%c2, %c0_61, %c0_62] : memref<4x32x32xf32, #tpu.memory_space<vmem>>, vector<1x32x32xf32>
    %94 = vector.shape_cast %93 : vector<1x32x32xf32> to vector<32x32xf32>
    %cst_63 = arith.constant dense<0.000000e+00> : vector<16x32xf32>
    %95 = tpu.matmul %92, %94, %cst_63 {dimension_numbers = #tpu.dot_dimension_numbers<[1], [0], [0], [1], [0, 0, 1, 1], [], []>} : vector<16x32xf32>, vector<32x32xf32>, vector<16x32xf32> -> vector<16x32xf32>
    %96 = arith.addf %88, %95 : vector<16x32xf32>
    %97 = vector.extract_strided_slice %67 {offsets = [0, 3], sizes = [32, 1], strides = [1, 1]} : vector<32x4xf32> to vector<32x1xf32>
    %98 = vector.broadcast %97 : vector<32x1xf32> to vector<32x32xf32>
    %99 = arith.mulf %98, %68 : vector<32x32xf32>
    %cst_64 = arith.constant dense<0.000000e+00> : vector<16x32xf32>
    %100 = tpu.matmul %33, %99, %cst_64 {dimension_numbers = #tpu.dot_dimension_numbers<[1], [0], [0], [1], [0, 0, 1, 1], [], []>} : vector<16x32xf32>, vector<32x32xf32>, vector<16x32xf32> -> vector<16x32xf32>
    %c3 = arith.constant 3 : index
    %c0_65 = arith.constant 0 : index
    %c0_66 = arith.constant 0 : index
    %101 = vector.load %arg12[%c3, %c0_65, %c0_66] : memref<4x32x32xf32, #tpu.memory_space<vmem>>, vector<1x32x32xf32>
    %102 = vector.shape_cast %101 : vector<1x32x32xf32> to vector<32x32xf32>
    %cst_67 = arith.constant dense<0.000000e+00> : vector<16x32xf32>
    %103 = tpu.matmul %100, %102, %cst_67 {dimension_numbers = #tpu.dot_dimension_numbers<[1], [0], [0], [1], [0, 0, 1, 1], [], []>} : vector<16x32xf32>, vector<32x32xf32>, vector<16x32xf32> -> vector<16x32xf32>
    %104 = arith.addf %96, %103 : vector<16x32xf32>
    %105 = vector.broadcast %53 : vector<16x1xf32> to vector<16x32xf32>
    %106 = arith.mulf %105, %104 : vector<16x32xf32>
    %107 = arith.addf %73, %106 : vector<16x32xf32>
    %cst_68 = arith.constant 0.000000e+00 : f32
    %108 = vector.broadcast %cst_68 : f32 to vector<16x32xf32>
    %109 = arith.maximumf %107, %108 : vector<16x32xf32>
    %c0_69 = arith.constant 0 : index
    %c0_70 = arith.constant 0 : index
    %110 = vector.load %arg19[%c0_69, %c0_70] : memref<32x4xf32, #tpu.memory_space<vmem>>, vector<32x4xf32>
    %cst_71 = arith.constant dense<0.000000e+00> : vector<2x4xf32>
    %111 = tpu.matmul %19, %110, %cst_71 {dimension_numbers = #tpu.dot_dimension_numbers<[1], [0], [0], [1], [0, 0, 1, 1], [], []>} : vector<2x32xf32>, vector<32x4xf32>, vector<2x4xf32> -> vector<2x4xf32>
    %c0_72 = arith.constant 0 : index
    %c0_73 = arith.constant 0 : index
    %112 = vector.load %arg20[%c0_72, %c0_73] : memref<1x4xf32, #tpu.memory_space<vmem>>, vector<1x4xf32>
    %113 = vector.broadcast %112 : vector<1x4xf32> to vector<2x4xf32>
    %114 = arith.addf %111, %113 : vector<2x4xf32>
    %cst_74 = arith.constant 0.000000e+00 : f32
    %115 = vector.broadcast %cst_74 : f32 to vector<2x4xf32>
    %116 = arith.subf %115, %114 : vector<2x4xf32>
    %117 = math.exp %116 : vector<2x4xf32>
    %cst_75 = arith.constant 1.000000e+00 : f32
    %118 = vector.broadcast %cst_75 : f32 to vector<2x4xf32>
    %119 = arith.addf %118, %117 : vector<2x4xf32>
    %cst_76 = arith.constant 1.000000e+00 : f32
    %120 = vector.broadcast %cst_76 : f32 to vector<2x4xf32>
    %121 = arith.divf %120, %119 : vector<2x4xf32>
    %cst_77 = arith.constant dense<0.000000e+00> : vector<32x4xf32>
    %122 = tpu.matmul %47, %121, %cst_77 {dimension_numbers = #tpu.dot_dimension_numbers<[1], [0], [0], [1], [0, 0, 1, 1], [], []>} : vector<32x2xf32>, vector<2x4xf32>, vector<32x4xf32> -> vector<32x4xf32>
    %123 = arith.mulf %122, %40 : vector<32x4xf32>
    %cst_78 = arith.constant dense<0.000000e+00> : vector<32x32xf32>
    %124 = tpu.matmul %26, %109, %cst_78 {dimension_numbers = #tpu.dot_dimension_numbers<[1], [0], [0], [1], [0, 0, 1, 1], [], []>} : vector<32x16xf32>, vector<16x32xf32>, vector<32x32xf32> -> vector<32x32xf32>
    %c0_79 = arith.constant 0 : index
    %c0_80 = arith.constant 0 : index
    %125 = vector.load %arg16[%c0_79, %c0_80] : memref<32x32xf32, #tpu.memory_space<vmem>>, vector<32x32xf32>
    %cst_81 = arith.constant dense<0.000000e+00> : vector<16x32xf32>
    %126 = tpu.matmul %109, %125, %cst_81 {dimension_numbers = #tpu.dot_dimension_numbers<[1], [0], [0], [1], [0, 0, 1, 1], [], []>} : vector<16x32xf32>, vector<32x32xf32>, vector<16x32xf32> -> vector<16x32xf32>
    %c0_82 = arith.constant 0 : index
    %c0_83 = arith.constant 0 : index
    %127 = vector.load %arg18[%c0_82, %c0_83] : memref<1x32xf32, #tpu.memory_space<vmem>>, vector<1x32xf32>
    %128 = vector.broadcast %127 : vector<1x32xf32> to vector<16x32xf32>
    %129 = arith.addf %126, %128 : vector<16x32xf32>
    %130 = vector.extract_strided_slice %123 {offsets = [0, 0], sizes = [32, 1], strides = [1, 1]} : vector<32x4xf32> to vector<32x1xf32>
    %131 = vector.broadcast %130 : vector<32x1xf32> to vector<32x32xf32>
    %132 = arith.mulf %131, %124 : vector<32x32xf32>
    %cst_84 = arith.constant dense<0.000000e+00> : vector<16x32xf32>
    %133 = tpu.matmul %33, %132, %cst_84 {dimension_numbers = #tpu.dot_dimension_numbers<[1], [0], [0], [1], [0, 0, 1, 1], [], []>} : vector<16x32xf32>, vector<32x32xf32>, vector<16x32xf32> -> vector<16x32xf32>
    %c0_85 = arith.constant 0 : index
    %c0_86 = arith.constant 0 : index
    %c0_87 = arith.constant 0 : index
    %134 = vector.load %arg17[%c0_85, %c0_86, %c0_87] : memref<4x32x32xf32, #tpu.memory_space<vmem>>, vector<1x32x32xf32>
    %135 = vector.shape_cast %134 : vector<1x32x32xf32> to vector<32x32xf32>
    %cst_88 = arith.constant dense<0.000000e+00> : vector<16x32xf32>
    %136 = tpu.matmul %133, %135, %cst_88 {dimension_numbers = #tpu.dot_dimension_numbers<[1], [0], [0], [1], [0, 0, 1, 1], [], []>} : vector<16x32xf32>, vector<32x32xf32>, vector<16x32xf32> -> vector<16x32xf32>
    %137 = vector.extract_strided_slice %123 {offsets = [0, 1], sizes = [32, 1], strides = [1, 1]} : vector<32x4xf32> to vector<32x1xf32>
    %138 = vector.broadcast %137 : vector<32x1xf32> to vector<32x32xf32>
    %139 = arith.mulf %138, %124 : vector<32x32xf32>
    %cst_89 = arith.constant dense<0.000000e+00> : vector<16x32xf32>
    %140 = tpu.matmul %33, %139, %cst_89 {dimension_numbers = #tpu.dot_dimension_numbers<[1], [0], [0], [1], [0, 0, 1, 1], [], []>} : vector<16x32xf32>, vector<32x32xf32>, vector<16x32xf32> -> vector<16x32xf32>
    %c1_90 = arith.constant 1 : index
    %c0_91 = arith.constant 0 : index
    %c0_92 = arith.constant 0 : index
    %141 = vector.load %arg17[%c1_90, %c0_91, %c0_92] : memref<4x32x32xf32, #tpu.memory_space<vmem>>, vector<1x32x32xf32>
    %142 = vector.shape_cast %141 : vector<1x32x32xf32> to vector<32x32xf32>
    %cst_93 = arith.constant dense<0.000000e+00> : vector<16x32xf32>
    %143 = tpu.matmul %140, %142, %cst_93 {dimension_numbers = #tpu.dot_dimension_numbers<[1], [0], [0], [1], [0, 0, 1, 1], [], []>} : vector<16x32xf32>, vector<32x32xf32>, vector<16x32xf32> -> vector<16x32xf32>
    %144 = arith.addf %136, %143 : vector<16x32xf32>
    %145 = vector.extract_strided_slice %123 {offsets = [0, 2], sizes = [32, 1], strides = [1, 1]} : vector<32x4xf32> to vector<32x1xf32>
    %146 = vector.broadcast %145 : vector<32x1xf32> to vector<32x32xf32>
    %147 = arith.mulf %146, %124 : vector<32x32xf32>
    %cst_94 = arith.constant dense<0.000000e+00> : vector<16x32xf32>
    %148 = tpu.matmul %33, %147, %cst_94 {dimension_numbers = #tpu.dot_dimension_numbers<[1], [0], [0], [1], [0, 0, 1, 1], [], []>} : vector<16x32xf32>, vector<32x32xf32>, vector<16x32xf32> -> vector<16x32xf32>
    %c2_95 = arith.constant 2 : index
    %c0_96 = arith.constant 0 : index
    %c0_97 = arith.constant 0 : index
    %149 = vector.load %arg17[%c2_95, %c0_96, %c0_97] : memref<4x32x32xf32, #tpu.memory_space<vmem>>, vector<1x32x32xf32>
    %150 = vector.shape_cast %149 : vector<1x32x32xf32> to vector<32x32xf32>
    %cst_98 = arith.constant dense<0.000000e+00> : vector<16x32xf32>
    %151 = tpu.matmul %148, %150, %cst_98 {dimension_numbers = #tpu.dot_dimension_numbers<[1], [0], [0], [1], [0, 0, 1, 1], [], []>} : vector<16x32xf32>, vector<32x32xf32>, vector<16x32xf32> -> vector<16x32xf32>
    %152 = arith.addf %144, %151 : vector<16x32xf32>
    %153 = vector.extract_strided_slice %123 {offsets = [0, 3], sizes = [32, 1], strides = [1, 1]} : vector<32x4xf32> to vector<32x1xf32>
    %154 = vector.broadcast %153 : vector<32x1xf32> to vector<32x32xf32>
    %155 = arith.mulf %154, %124 : vector<32x32xf32>
    %cst_99 = arith.constant dense<0.000000e+00> : vector<16x32xf32>
    %156 = tpu.matmul %33, %155, %cst_99 {dimension_numbers = #tpu.dot_dimension_numbers<[1], [0], [0], [1], [0, 0, 1, 1], [], []>} : vector<16x32xf32>, vector<32x32xf32>, vector<16x32xf32> -> vector<16x32xf32>
    %c3_100 = arith.constant 3 : index
    %c0_101 = arith.constant 0 : index
    %c0_102 = arith.constant 0 : index
    %157 = vector.load %arg17[%c3_100, %c0_101, %c0_102] : memref<4x32x32xf32, #tpu.memory_space<vmem>>, vector<1x32x32xf32>
    %158 = vector.shape_cast %157 : vector<1x32x32xf32> to vector<32x32xf32>
    %cst_103 = arith.constant dense<0.000000e+00> : vector<16x32xf32>
    %159 = tpu.matmul %156, %158, %cst_103 {dimension_numbers = #tpu.dot_dimension_numbers<[1], [0], [0], [1], [0, 0, 1, 1], [], []>} : vector<16x32xf32>, vector<32x32xf32>, vector<16x32xf32> -> vector<16x32xf32>
    %160 = arith.addf %152, %159 : vector<16x32xf32>
    %161 = vector.broadcast %53 : vector<16x1xf32> to vector<16x32xf32>
    %162 = arith.mulf %161, %160 : vector<16x32xf32>
    %163 = arith.addf %129, %162 : vector<16x32xf32>
    %c0_104 = arith.constant 0 : index
    %c0_105 = arith.constant 0 : index
    %164 = vector.load %arg21[%c0_104, %c0_105] : memref<16x32xf32, #tpu.memory_space<vmem>>, vector<16x32xf32>
    tpu.vector_store %arg21[%c0_104, %c0_105], %163 {strides = array<i32>} : memref<16x32xf32, #tpu.memory_space<vmem>>, vector<16x32xf32>,
    return
  }
}

</mosaic_0001>

<bundles_post_ra>
// kernel: query_aware_rgcn_forward.1
= control target key start
LH: loop header
LB: loop body
LE: loop exit
PB: predicated region body
PF: predicated region fallthrough
CT: control target
= control target key end

     0   :  { %s4400_s0 = inlined_call_operand.vmem [shape: s32[16,1], index: 0, kind: input, shape index: {}]   ;;  %s4401_s1 = inlined_call_operand.vmem [shape: s32[32,1], index: 1, kind: input, shape index: {}]   ;;  %s4402_s2 = inlined_call_operand.vmem [shape: s32[1,32], index: 2, kind: input, shape index: {}]   ;;  %s4403_s3 = inlined_call_operand.vmem [shape: s32[32,1], index: 3, kind: input, shape index: {}]   ;;  %s4404_s4 = inlined_call_operand.vmem [shape: s32[32,1], index: 4, kind: input, shape index: {}]   ;;  %s4405_s5 = inlined_call_operand.vmem [shape: f32[50,32], index: 5, kind: input, shape index: {}]   ;;  %s4406_s6 = inlined_call_operand.hbm [shape: f32[32,32], index: 6, kind: input, shape index: {}]   ;;  %s4407_s7 = inlined_call_operand.vmem [shape: f32[1,32], index: 7, kind: input, shape index: {}]   ;;  %s4408_s8 = inlined_call_operand.vmem [shape: f32[16,32], index: 8, kind: input, shape index: {}]   ;;  %s4409_s9 = inlined_call_operand.vmem [shape: f32[1,32], index: 9, kind: input, shape index: {}]   ;;  %s4410_s10 = inlined_call_operand.vmem [shape: f32[2,16], index: 10, kind: input, shape index: {}]   ;;  %s4411_s11 = inlined_call_operand.hbm [shape: f32[32,32], index: 11, kind: input, shape index: {}]   ;;  %s4412_s12 = inlined_call_operand.hbm [shape: f32[4,32,32], index: 12, kind: input, shape index: {}]   ;;  %s4413_s13 = inlined_call_operand.vmem [shape: f32[1,32], index: 13, kind: input, shape index: {}]   ;;  %s4414_s14 = inlined_call_operand.hbm [shape: f32[32,4], index: 14, kind: input, shape index: {}]   ;;  %s4415_s15 = inlined_call_operand.vmem [shape: f32[1,4], index: 15, kind: input, shape index: {}]   ;;  %s4416_s16 = inlined_call_operand.hbm [shape: f32[32,32], index: 16, kind: input, shape index: {}]   ;;  %s4417_s17 = inlined_call_operand.vmem [shape: f32[4,32,32], index: 17, kind: input, shape index: {}]   ;;  %s4418_s18 = inlined_call_operand.vmem [shape: f32[1,32], index: 18, kind: input, shape index: {}]   ;;  %s4419_s19 = inlined_call_operand.hbm [shape: f32[32,4], index: 19, kind: input, shape index: {}]   ;;  %s4420_s20 = inlined_call_operand.hbm [shape: f32[1,4], index: 20, kind: input, shape index: {}]   ;;  %s4421_s21 = inlined_call_operand.hbm [shape: f32[16,32], index: 21, kind: output, shape index: {}]  }
   0x1   :  { %4427 = sst [smem:[#allocation20_spill]] %s4400_s0 }
   0x2   :  { %4428 = sst [smem:[#allocation21_spill]] %s4401_s1 }
   0x3   :  { %4429 = sst [smem:[#allocation22_spill]] %s4402_s2 }
   0x4   :  { %4430 = sst [smem:[#allocation23_spill]] %s4403_s3 }
   0x5   :  { %4431 = sst [smem:[#allocation24_spill]] %s4404_s4 }
   0x6   :  { %4432 = sst [smem:[#allocation25_spill]] %s4405_s5 }
   0x7   :  { %26 = vsyncpa [#allocation3], 0 }
   0x8   :  { %27 = vsyncpa [#allocation6], 0 }
   0x9   :  { %28 = vsyncpa [#allocation9], 0 }
   0xa   :  { %29 = vsyncpa [#allocation12], 0 }
   0xb   :  { %30 = vsyncpa [#allocation4], 0  ;;  %s3752_s2 = smov [#allocation5]   ;;  %s3753_s26 = smov [#allocation8]  }
   0xc   :  { %s68_s25 = sshll.u32 %s3752_s2, 4  ;;  %s94_s27 = sshll.u32 %s3753_s26, 4  ;;  %s69_s25 = int_to_ptr.vmem [resolvable:$true] %s68_s25  ;;  %s3879_s27 = int_to_ptr.vmem [resolvable:$true] %s94_s27 }
   0xd   :  { %s3566_s29 = scalar_lea.hbm %s4411_s11, 512 }
   0xe   :  { %p3567_p0 = scmp.ne.s32.totalorder %s4411_s11, %s3566_s29  ;;  %p3570_p1 = scmp.lt.u32.totalorder %s3566_s29, %s4411_s11 }
  0x10   :  { %p3572_p2 = pnand %p3570_p1, %p3567_p0 }
  0x12   :  { %3575 = shalt.err (!%p3572_p2)
}
  0x13   :  { %s3576_s22 = scalar_lea.vmem %s69_s25, 512  ;;  %p3581_p4 = scmp.lt.s32.totalorder %s69_s25, %s69_s25 }
  0x14   :  { %p3577_p3 = scmp.ne.s32.totalorder %s69_s25, %s3576_s22  ;;  %p3582_p5 = scmp.lt.s32.totalorder %s3576_s22, %s3576_s22 }
  0x16   :  { %p3583_p6 = por %p3582_p5, %p3581_p4 }
  0x18   :  { %p3584_p7 = pnand %p3583_p6, %p3577_p3 }
  0x1a   :  { %3587 = shalt.err (!%p3584_p7)
}
  0x1b   :  { %s3754_s23 = smov 128   ;;  %s3755_s1 = smov 8  }
  0x1c   :  { %74 = dma.hbm_to_vmem [thread:$0]  %s4411_s11, 512, %s69_s25, [#allocation6], %s3754_s23, %s3754_s23, %s3755_s1  }
  0x1d   :  { %s3588_s28 = scalar_lea.hbm %s4414_s14, 512 }
  0x1e   :  { %p3589_p8 = scmp.ne.s32.totalorder %s4414_s14, %s3588_s28  ;;  %p3592_p9 = scmp.lt.u32.totalorder %s3588_s28, %s4414_s14 }
  0x20   :  { %p3594_p10 = pnand %p3592_p9, %p3589_p8 }
  0x22   :  { %3597 = shalt.err (!%p3594_p10)
}
  0x23   :  { %s3598_s5 = scalar_lea.vmem %s3879_s27, 512  ;;  %p3603_p12 = scmp.lt.s32.totalorder %s3879_s27, %s3879_s27 }
  0x24   :  { %p3599_p11 = scmp.ne.s32.totalorder %s3879_s27, %s3598_s5  ;;  %p3604_p13 = scmp.lt.s32.totalorder %s3598_s5, %s3598_s5 }
  0x26   :  { %p3605_p0 = por %p3604_p13, %p3603_p12 }
  0x28   :  { %p3606_p1 = pnand %p3605_p0, %p3599_p11 }
  0x2a   :  { %3609 = shalt.err (!%p3606_p1)
}
  0x2b   :  { %100 = dma.hbm_to_vmem [thread:$0]  %s4414_s14, 512, %s3879_s27, [#allocation9], %s3754_s23, %s3754_s23, %s3755_s1  }
  0x2c   :  { %s3756_s22 = smov [#allocation11]   ;;  %s3757_s2 = smov [#allocation2]  }
  0x2d   :  { %s124_s24 = sshll.u32 %s3756_s22, 4  ;;  %s48_s26 = sshll.u32 %s3757_s2, 4  ;;  %s125_s24 = int_to_ptr.vmem [resolvable:$true] %s124_s24  ;;  %s3916_s26 = int_to_ptr.vmem [resolvable:$true] %s48_s26 }
  0x2e   :  { %s3610_s29 = scalar_lea.hbm %s4419_s19, 512 }
  0x2f   :  { %p3611_p2 = scmp.ne.s32.totalorder %s4419_s19, %s3610_s29  ;;  %p3614_p3 = scmp.lt.u32.totalorder %s3610_s29, %s4419_s19 }
  0x31   :  { %p3616_p4 = pnand %p3614_p3, %p3611_p2 }
  0x33   :  { %3619 = shalt.err (!%p3616_p4)
}
  0x34   :  { %s3620_s14 = scalar_lea.vmem %s125_s24, 512  ;;  %p3625_p6 = scmp.lt.s32.totalorder %s125_s24, %s125_s24 }
  0x35   :  { %p3621_p5 = scmp.ne.s32.totalorder %s125_s24, %s3620_s14  ;;  %p3626_p7 = scmp.lt.s32.totalorder %s3620_s14, %s3620_s14 }
  0x37   :  { %p3627_p8 = por %p3626_p7, %p3625_p6 }
  0x39   :  { %p3628_p9 = pnand %p3627_p8, %p3621_p5 }
  0x3b   :  { %3631 = shalt.err (!%p3628_p9)
}
  0x3c   :  { %130 = dma.hbm_to_vmem [thread:$0]  %s4419_s19, 512, %s125_s24, [#allocation12], %s3754_s23, %s3754_s23, %s3755_s1  }
  0x3d   :  { %s3632_s2 = scalar_lea.hbm %s4406_s6, 512 }
  0x3e   :  { %p3633_p10 = scmp.ne.s32.totalorder %s4406_s6, %s3632_s2  ;;  %p3636_p11 = scmp.lt.u32.totalorder %s3632_s2, %s4406_s6 }
  0x40   :  { %p3638_p12 = pnand %p3636_p11, %p3633_p10 }
  0x42   :  { %3641 = shalt.err (!%p3638_p12)
}
  0x43   :  { %s3642_s4 = scalar_lea.vmem %s3916_s26, 512  ;;  %p3647_p0 = scmp.lt.s32.totalorder %s3916_s26, %s3916_s26 }
  0x44   :  { %p3643_p13 = scmp.ne.s32.totalorder %s3916_s26, %s3642_s4  ;;  %p3648_p1 = scmp.lt.s32.totalorder %s3642_s4, %s3642_s4 }
  0x46   :  { %p3649_p2 = por %p3648_p1, %p3647_p0 }
  0x48   :  { %p3650_p3 = pnand %p3649_p2, %p3643_p13 }
  0x4a   :  { %3653 = shalt.err (!%p3650_p3)
}
  0x4b   :  { %54 = dma.hbm_to_vmem [thread:$0]  %s4406_s6, 512, %s3916_s26, [#allocation3], %s3754_s23, %s3754_s23, %s3755_s1  }
  0x4c   :  { %s3758_s30 = smov [#allocation7]   ;;  %s3759_s14 = smov [#allocation10]  }
  0x4d   :  { %s80_s5 = sshll.u32 %s3758_s30, 4  ;;  %s108_s27 = sshll.u32 %s3759_s14, 4  ;;  %s81_s5 = int_to_ptr.vmem [resolvable:$true] %s80_s5  ;;  %s3953_s27 = int_to_ptr.vmem [resolvable:$true] %s108_s27 }
  0x4e   :  { %s3654_s22 = scalar_lea.hbm %s4412_s12, 2048 }
  0x4f   :  { %p3655_p4 = scmp.ne.s32.totalorder %s4412_s12, %s3654_s22  ;;  %p3658_p5 = scmp.lt.u32.totalorder %s3654_s22, %s4412_s12 }
  0x51   :  { %p3660_p6 = pnand %p3658_p5, %p3655_p4 }
  0x53   :  { %3663 = shalt.err (!%p3660_p6)
}
  0x54   :  { %s3664_s6 = scalar_lea.vmem %s81_s5, 2048  ;;  %p3669_p8 = scmp.lt.s32.totalorder %s81_s5, %s81_s5 }
  0x55   :  { %p3665_p7 = scmp.ne.s32.totalorder %s81_s5, %s3664_s6  ;;  %p3670_p9 = scmp.lt.s32.totalorder %s3664_s6, %s3664_s6 }
  0x57   :  { %p3671_p10 = por %p3670_p9, %p3669_p8 }
  0x59   :  { %p3672_p11 = pnand %p3671_p10, %p3665_p7 }
  0x5b   :  { %3675 = shalt.err (!%p3672_p11)
}
  0x5c   :  { %86 = dma.hbm_to_vmem [thread:$0]  %s4412_s12, 2048, %s81_s5, [#allocation6], %s3754_s23, %s3754_s23, %s3755_s1  }
  0x5d   :  { %s3676_s24 = scalar_lea.hbm %s4416_s16, 512 }
  0x5e   :  { %p3677_p12 = scmp.ne.s32.totalorder %s4416_s16, %s3676_s24  ;;  %p3680_p13 = scmp.lt.u32.totalorder %s3676_s24, %s4416_s16 }
  0x60   :  { %p3682_p0 = pnand %p3680_p13, %p3677_p12 }
  0x62   :  { %3685 = shalt.err (!%p3682_p0)
}
  0x63   :  { %s3686_s22 = scalar_lea.vmem %s3953_s27, 512  ;;  %p3691_p2 = scmp.lt.s32.totalorder %s3953_s27, %s3953_s27 }
  0x64   :  { %p3687_p1 = scmp.ne.s32.totalorder %s3953_s27, %s3686_s22  ;;  %p3692_p3 = scmp.lt.s32.totalorder %s3686_s22, %s3686_s22 }
  0x66   :  { %p3693_p4 = por %p3692_p3, %p3691_p2 }
  0x68   :  { %p3694_p5 = pnand %p3693_p4, %p3687_p1 }
  0x6a   :  { %3697 = shalt.err (!%p3694_p5)
}
  0x6b   :  { %114 = dma.hbm_to_vmem [thread:$0]  %s4416_s16, 512, %s3953_s27, [#allocation9], %s3754_s23, %s3754_s23, %s3755_s1  }
  0x6c   :  { %s3760_s2 = smov [#allocation13]   ;;  %s3698_s6 = scalar_lea.hbm %s4420_s20, 16 }
  0x6d   :  { %s137_s3 = sshll.u32 %s3760_s2, 4  ;;  %p3699_p6 = scmp.ne.s32.totalorder %s4420_s20, %s3698_s6  ;;  %s138_s3 = int_to_ptr.vmem [resolvable:$true] %s137_s3 }
  0x6e   :  { %p3702_p7 = scmp.lt.u32.totalorder %s3698_s6, %s4420_s20 }
  0x70   :  { %p3704_p8 = pnand %p3702_p7, %p3699_p6 }
  0x72   :  { %3707 = shalt.err (!%p3704_p8)
}
  0x73   :  { %s3708_s24 = scalar_lea.vmem %s138_s3, 16  ;;  %s3712_s16 = scalar_lea.vmem %s138_s3, 32 }
  0x74   :  { %p3709_p9 = scmp.ne.s32.totalorder %s138_s3, %s3708_s24  ;;  %p3713_p10 = scmp.lt.s32.totalorder %s138_s3, %s138_s3 }
  0x75   :  { %p3714_p11 = scmp.lt.s32.totalorder %s3712_s16, %s3708_s24 }
  0x77   :  { %p3715_p12 = por %p3714_p11, %p3713_p10 }
  0x79   :  { %p3716_p13 = pnand %p3715_p12, %p3709_p9 }
  0x7b   :  { %3719 = shalt.err (!%p3716_p13)
}
  0x7c   :  { %140 = dma.hbm_to_vmem [thread:$0]  %s4420_s20, 16, %s138_s3, [#allocation12]  }
  0x7d   :  { %3742 = dma.done.wait [#allocation3], 512  }
  0x7e   :  { %3743 = vsyncadd [#allocation3], 4294966784 }
  0x7f   :  { %3744 = dma.done.wait [#allocation6], 2560  }
  0x80   :  { %3745 = vsyncadd [#allocation6], 4294964736 }
  0x81   :  { %3746 = dma.done.wait [#allocation9], 1024  }
  0x82   :  { %3747 = vsyncadd [#allocation9], 4294966272 }
  0x83   :  { %3748 = dma.done.wait [#allocation12], 528  }
  0x84   :  { %3749 = vsyncadd [#allocation12], 4294966768  ;;  %v3761_v0 = vmov 0   ;;  %v3762_v1 = vmov 0.0|0.0   ;;  %vm3763_vm0 = vmmov 0   ;;  %v3764_v2 = vmov 0.0  }
  0x85   :  { %3528 = vset.pattern.permute.xlu0 %v3761_v0  ;;  %3332 = vmatprep.subr.bf16.mxu1 %v3762_v1  ;;  %s4433_s11 = sld [smem:[#allocation20_spill]]  ;;  %v363_v4 = vld [vmem:[%s4408_s8] sm:$0xff]  ;;  %v364_v5 = vld [vmem:[%s4408_s8 + $0x8] sm:$0xff]  ;;  %vm372_vm1 = vcmask 130048   ;;  %s4434_s0 = sld [smem:[#allocation25_spill]]  ;;  %vm190_vm2 = vcmask 1041408   ;;  %v164_v40 = vlaneseq }
  0x86   :  { %3053 = vmatprep.mubr.msk.f32.mxu1 %vm3763_vm0, %v3764_v2  ;;  %3529 = vset.pattern.permute.xlu1 %v3761_v0  ;;  %v3333_v6 = vpack.c.bf16 %v364_v5, %v363_v4  ;;  %v362_v8 = vld [vmem:[%s4410_s10] sm:$0x3]  ;;  %s4435_s22 = sld [smem:[#allocation24_spill]]  ;;  %s4436_s2 = sld [smem:[#allocation21_spill]]  ;;  %v543_v25 = vld [vmem:[#allocation8 + $0x8] sm:$0xff]  ;;  %v544_v27 = vld [vmem:[#allocation8 + $0x10] sm:$0xff] }
  0x87   :  { %s4437_s19 = sld [smem:[#allocation23_spill]]  ;;  %v542_v24 = vld [vmem:[#allocation8] sm:$0xff]  ;;  %v545_v28 = vld [vmem:[#allocation8 + $0x18] sm:$0xff]  ;;  %v270_v33 = vld [vmem:[#allocation2 + $0x8] sm:$0xff]  ;;  %v4087_v41 = vand.u32 127, %v164_v40  ;;  %vm183_vm3 = vcmask 408576  }
  0x88   :  { %3334 = vmatpush3.bf16.msra.mxu1 %v3333_v6  ;;  %v3336_v26 = vpack.c.bf16 %v543_v25, %v542_v24  ;;  %v3339_v29 = vpack.c.bf16 %v545_v28, %v544_v27  ;;  %v269_v32 = vld [vmem:[#allocation2] sm:$0xff]  ;;  %v271_v44 = vld [vmem:[#allocation2 + $0x10] sm:$0xff]  ;;  %v272_v45 = vld [vmem:[#allocation2 + $0x18] sm:$0xff]  ;;  %vm280_vm7 = vcmask 261120   ;;  %vm632_vm9 = vcmask 15360  }
  0x89   :  { %3335 = vmatprep.subr.bf16.mxu1 %v3762_v1  ;;  %v3324_v34 = vpack.c.bf16 %v270_v33, %v269_v32  ;;  %v3328_v47 = vpack.c.bf16 %v272_v45, %v271_v44  ;;  %v2788_v50 = vld [vmem:[%s4409_s9] ss:$0 sm:$0xff] }
  0x8a   :  { %v2791_v60 = vld [vmem:[%s4415_s15] ss:$0 sm:$0xff] }
  0x8b   :  { %v162_v3 = vld [vmem:[%s4433_s11] sm:$0xff]  ;;  %v163_v7 = vld [vmem:[%s4433_s11 + $0x8] sm:$0xff]  ;;  %v178_v12 = vld [vmem:[%s4434_s0 + $0x10] sm:$0xff]  ;;  %3054 = vmatmul.mubr.msk.f32.vlgmr.msra.gmra.mrb[0].mxu1 %vm372_vm1, %v362_v8 }
  0x8c   :  { %167 = vperm.xlu0 %3528, %v162_v3   ;;  %v176_v9 = vld [vmem:[%s4434_s0] sm:$0xff]  ;;  %v177_v10 = vld [vmem:[%s4434_s0 + $0x8] sm:$0xff]  ;;  %v179_v13 = vld [vmem:[%s4434_s0 + $0x18] sm:$0xff]  ;;  %3064 = vmatprep.mubr.msk.f32.mxu1 %vm3763_vm0, %v3764_v2 }
  0x8d   :  { %v3312_v11 = vpack.c.bf16 %v177_v10, %v176_v9  ;;  %v3316_v14 = vpack.c.bf16 %v179_v13, %v178_v12  ;;  %v180_v15 = vld [vmem:[%s4434_s0 + $0x20] sm:$0xff]  ;;  %v181_v16 = vld [vmem:[%s4434_s0 + $0x28] sm:$0xff]  ;;  %v508_v17 = vld [vmem:[%s4435_s22 + $0x10] sm:$0xff]  ;;  %3337 = vmatpush3.bf16.msra.mxu1 %v3336_v26 }
  0x8e   :  { %v3320_v18 = vpack.c.bf16 %v181_v16, %v180_v15  ;;  %v446_v19 = vld [vmem:[%s4436_s2] sm:$0xff]  ;;  %v182_v20 = vld [vmem:[%s4434_s0 + $0x30] sm:$0x3]  ;;  %3338 = vmatprep.subr.bf16.mxu1 %v3762_v1  ;;  %v507_v31 = vld [vmem:[%s4435_s22 + $0x8] sm:$0xff] }
  0x8f   :  { %3313 = vmatprep.subr.bf16.mxu0 %v3312_v11  ;;  %v448_v21 = vld [vmem:[%s4436_s2 + $0x10] sm:$0xff]  ;;  %v482_v22 = vld [vmem:[%s4437_s19] sm:$0xff]  ;;  %v509_v35 = vld [vmem:[%s4435_s22 + $0x18] sm:$0xff] }
  0x90   :  { %170 = vperm.xlu0 %3528, %v163_v7   ;;  %3315 = vmatpush3.bf16.msra.mxu0 %v3312_v11  ;;  %v484_v23 = vld [vmem:[%s4437_s19 + $0x10] sm:$0xff]  ;;  %v506_v30 = vld [vmem:[%s4435_s22] sm:$0xff]  ;;  %v447_v36 = vld [vmem:[%s4436_s2 + $0x8] sm:$0xff] }
  0x91   :  { %3317 = vmatprep.subr.bf16.mxu0 %v3316_v14  ;;  %3340 = vmatpush3.bf16.msra.mxu1 %v3339_v29  ;;  %v449_v37 = vld [vmem:[%s4436_s2 + $0x18] sm:$0xff]  ;;  %v483_v38 = vld [vmem:[%s4437_s19 + $0x8] sm:$0xff]  ;;  %v834_v8 = vld [vmem:[#allocation5] sm:$0xff] }
  0x92   :  { %511 = vperm.xlu1 %3529, %v506_v30   ;;  %v485_v39 = vld [vmem:[%s4437_s19 + $0x18] sm:$0xff]  ;;  %v835_v9 = vld [vmem:[#allocation5 + $0x8] sm:$0xff]  ;;  %v836_v10 = vld [vmem:[#allocation5 + $0x10] sm:$0xff]  ;;  %s4438_s19 = sld [smem:[#allocation22_spill]] }
  0x93   :  { %v837_v11 = vld [vmem:[#allocation5 + $0x18] sm:$0xff]  ;;  %v3345_v12 = vpack.c.bf16 %v835_v9, %v834_v8 }
  0x94   :  { %517 = vperm.xlu0 %3528, %v508_v17   ;;  %3319 = vmatpush3.bf16.msra.mxu0 %v3316_v14  ;;  %v3349_v14 = vpack.c.bf16 %v837_v11, %v836_v10 }
  0x95   :  { %3321 = vmatprep.subr.bf16.mxu0 %v3320_v18 }
  0x96   :  { %514 = vperm.xlu1 %3529, %v507_v31  }
  0x98   :  { %451 = vperm.xlu0 %3528, %v446_v19   ;;  %3323 = vmatpush3.bf16.msra.mxu0 %v3320_v18  ;;  %v3765_v19 = vmov 1  }
  0x99   :  { %3033 = vmatprep.subr.msk.mxu0 %vm190_vm2, %v182_v20 }
  0x9a   :  { %520 = vperm.xlu1 %3529, %v509_v35  }
  0x9c   :  { %457 = vperm.xlu0 %3528, %v448_v21   ;;  %3034 = vmatpush3.msk.msra.mxu0 %vm190_vm2, %v182_v20  ;;  %v2785_v20 = vld [vmem:[%s4407_s7] ss:$0 sm:$0xff] }
  0x9d   :  { %3325 = vmatprep.subr.bf16.mxu0 %v3324_v34 }
  0x9e   :  { %454 = vperm.xlu1 %3529, %v447_v36  }
  0xa0   :  { %487 = vperm.xlu0 %3528, %v482_v22  }
  0xa2   :  { %460 = vperm.xlu1 %3529, %v449_v37  }
  0xa4   :  { %493 = vperm.xlu0 %3528, %v484_v23  }
  0xa6   :  { %490 = vperm.xlu1 %3529, %v483_v38  }
  0xaa   :  { %496 = vperm.xlu1 %3529, %v485_v39  }
  0xae   :  { %3530 = vset.pattern.permute.xlu1 %v3765_v19 }
 0x10b   :  { %v168_v42 = vpop.permute.xlu0 %167 }
 0x10c   :  { %vm172_vm4 = vcmp.eq.s32.totalorder %v168_v42, %v4087_v41 }
 0x10d   :  { %v174_v43 = vsel %vm172_vm4, 1.0, %v3764_v2 }
 0x10e   :  { %3035 = vmatprep.mubr.msk.f32.mxu0 %vm183_vm3, %v174_v43 }
 0x10f   :  { %v171_v46 = vpop.permute.xlu0 %170 }
 0x110   :  { %vm173_vm5 = vcmp.eq.s32.totalorder %v171_v46, %v4087_v41 }
 0x111   :  { %v175_v48 = vsel %vm173_vm5, 1.0, %v3764_v2  ;;  %v512_v56 = vpop.permute.xlu1 %511 }
 0x112   :  { %3036 = vmatmul.mubr.msk.f32.vlgmr.msra.gmra.mrb[0].mxu0 %vm183_vm3, %v175_v48  ;;  %vm522_vm8 = vcmp.eq.s32.totalorder %v512_v56, %v4087_v41 }
 0x113   :  { %3327 = vmatpush3.bf16.msra.mxu0 %v3324_v34  ;;  %v518_v49 = vpop.permute.xlu0 %517  ;;  %v4108_v59 = vsel %vm522_vm8, 1.0, %v3764_v2 }
 0x114   :  { %3329 = vmatprep.subr.bf16.mxu0 %v3328_v47  ;;  %vm524_vm11 = vcmp.eq.s32.totalorder %v518_v49, %v4087_v41 }
 0x115   :  { %v515_v7 = vpop.permute.xlu1 %514  ;;  %v4125_v17 = vsel %vm524_vm11, 1.0, %v3764_v2 }
 0x116   :  { %vm523_vm10 = vcmp.eq.s32.totalorder %v515_v7, %v4087_v41 }
 0x117   :  { %3331 = vmatpush3.bf16.msra.mxu0 %v3328_v47  ;;  %v452_v51 = vpop.permute.xlu0 %451  ;;  %v4121_v15 = vsel %vm523_vm10, 1.0, %v3764_v2 }
 0x118   :  { %vm462_vm6 = vcmp.eq.s32.totalorder %v452_v51, %v4087_v41  ;;  %v472_v51 = vshrl.u32 %v164_v40, 7 }
 0x119   :  { %v4100_v55 = vsel %vm462_vm6, 1.0, %v3764_v2  ;;  %v521_v16 = vpop.permute.xlu1 %520 }
 0x11a   :  { %vm525_vm12 = vcmp.eq.s32.totalorder %v521_v16, %v4087_v41 }
 0x11b   :  { %v4133_v18 = vsel %vm525_vm12, 1.0, %v3764_v2  ;;  %v458_v27 = vpop.permute.xlu0 %457 }
 0x11c   :  { %vm464_vm14 = vcmp.eq.s32.totalorder %v458_v27, %v4087_v41 }
 0x11d   :  { %v455_v25 = vpop.permute.xlu1 %454  ;;  %v4149_v30 = vsel %vm464_vm14, 1.0, %v3764_v2 }
 0x11e   :  { %vm463_vm13 = vcmp.eq.s32.totalorder %v455_v25, %v4087_v41 }
 0x11f   :  { %v4146_v28 = vsel %vm463_vm13, 1.0, %v3764_v2  ;;  %v488_v35 = vpop.permute.xlu0 %487 }
 0x120   :  { %vm498_vm4 = vcmp.eq.s32.totalorder %v488_v35, %v4087_v41  ;;  %v1132_v35 = vld [vmem:[#allocation7 + $0x28] sm:$0xff] }
 0x121   :  { %v461_v29 = vpop.permute.xlu1 %460  ;;  %v4168_v42 = vsel %vm498_vm4, 1.0, %v3764_v2 }
 0x122   :  { %vm465_vm15 = vcmp.eq.s32.totalorder %v461_v29, %v4087_v41 }
 0x123   :  { %v4157_v31 = vsel %vm465_vm15, 1.0, %v3764_v2  ;;  %v494_v45 = vpop.permute.xlu0 %493 }
 0x124   :  { %vm500_vm6 = vcmp.eq.s32.totalorder %v494_v45, %v4087_v41  ;;  %v1134_v45 = vld [vmem:[#allocation7 + $0x38] sm:$0xff] }
 0x125   :  { %v491_v32 = vpop.permute.xlu1 %490  ;;  %v4180_v48 = vsel %vm500_vm6, 1.0, %v3764_v2 }
 0x126   :  { %vm499_vm3 = vcmp.eq.s32.totalorder %v491_v32, %v4087_v41 }
 0x127   :  { %v4163_v33 = vsel %vm499_vm3, 1.0, %v3764_v2 }
 0x129   :  { %v497_v38 = vpop.permute.xlu1 %496 }
 0x12a   :  { %vm501_vm5 = vcmp.eq.s32.totalorder %v497_v38, %v4087_v41  ;;  %v2790_v41 = vld [vmem:[%s4438_s19] ss:$0 sm:$0xff] }
 0x12b   :  { %v4175_v46 = vsel %vm501_vm5, 1.0, %v3764_v2  ;;  %vm478_vm8 = vcmp.eq.s32.totalorder %v2790_v41, %v472_v51 }
 0x12c   :  { %v4192_v56 = vsel %vm478_vm8, 1.0, %v3764_v2 }
 0x15e   :  { %v442_v52 = vpop.f32.mrb[0].mxu1 }
 0x15f   :  { %v4097_v53 = vadd.f32 %v2788_v50, %v442_v52  ;;  %v3055_v54 = vpop.f32.mrb[1].mxu1  ;;  %v3766_v50 = vmov 2   ;;  %v473_v52 = vadd.s32 8, %v472_v51 }
 0x160   :  { %v3767_v54 = vmov 3  }
 0x161   :  { %3065 = vmatmul.mubr.msk.f32.vlgmr.msra.gmra.mrb[2].mxu1 %vm280_vm7, %v4097_v53  ;;  %vm479_vm10 = vcmp.eq.s32.totalorder %v2790_v41, %v473_v52 }
 0x162   :  { %3079 = vmatprep.mubr.msk.f32.mxu1 %vm372_vm1, %v4100_v55 }
 0x1e5   :  { %v3037_v57 = vpop.f32.mrb[0].mxu0 }
 0x1e6   :  { %v260_v58 = vpop.f32.mrb[1].mxu0 }
 0x1e7   :  { %3046 = vmatprep.mubr.msk.f32.mxu0 %vm280_vm7, %v260_v58 }
 0x1e8   :  { %3047 = vmatmul.mubr.msk.f32.vlgmr.msra.gmra.mrb[2].mxu0 %vm280_vm7, %v3037_v57 }
 0x1e9   :  { %3069 = vmatprep.mubr.msk.f32.mxu0 %vm632_vm9, %v4108_v59 }
 0x234   :  { %v622_v61 = vpop.f32.mrb[2].mxu1 }
 0x235   :  { %v623_v62 = vadd.f32 %v2791_v60, %v622_v61  ;;  %v3066_v63 = vpop.f32.mrb[3].mxu1 }
 0x237   :  { %v626_v3 = vsub.f32 0.0, %v623_v62 }
 0x239   :  { %v627_v4 = vmul.f32 1.442695, %v626_v3 }
 0x23b   :  { %3554 = vpow2.f32 %v627_v4 }
 0x245   :  { %v3555_v5 = vpop.eup %3554 }
 0x246   :  { %v629_v6 = vadd.f32 1.0, %v3555_v5 }
 0x248   :  { %3556 = vrcp.f32 %v629_v6 }
 0x252   :  { %v3557_v13 = vpop.eup %3556 }
 0x253   :  { %3067 = vmatprep.subr.msk.mxu0 %vm190_vm2, %v3557_v13 }
 0x254   :  { %3068 = vmatpush3.msk.msra.mxu0 %vm190_vm2, %v3557_v13 }
 0x255   :  { %3070 = vmatmul.mubr.msk.f32.vlgmr.msra.gmra.mrb[4].mxu0 %vm632_vm9, %v4121_v15  ;;  %3346 = vmatprep.subr.bf16.mxu0 %v3345_v12 }
 0x256   :  { %3072 = vmatprep.mubr.msk.f32.mxu0 %vm632_vm9, %v4125_v17  ;;  %3348 = vmatpush3.bf16.msra.mxu0 %v3345_v12 }
 0x257   :  { %3350 = vmatprep.subr.bf16.mxu0 %v3349_v14 }
 0x259   :  { %3073 = vmatmul.mubr.msk.f32.gmra.mrb[6].mxu0 %vm632_vm9, %v4133_v18 }
 0x25a   :  { %3352 = vmatpush3.bf16.msra.mxu0 %v3349_v14 }
 0x2bb   :  { %v3048_v21 = vpop.f32.mrb[2].mxu0 }
 0x2bc   :  { %v359_v22 = vadd.f32 %v3048_v21, %v2785_v20  ;;  %v353_v23 = vpop.f32.mrb[3].mxu0 }
 0x2bd   :  { %v354_v24 = vadd.f32 %v2785_v20, %v353_v23 }
 0x2bf   :  { %v3341_v26 = vpack.c.bf16 %v359_v22, %v354_v24  ;;  %3093 = vmatprep.mubr.msk.f32.mxu0 %vm280_vm7, %v354_v24 }
 0x2c0   :  { %3094 = vmatmul.mubr.msk.f32.vlgmr.msra.gmra.mrb[8].mxu0 %vm280_vm7, %v359_v22 }
 0x2c1   :  { %3342 = vmatprep.subr.bf16.mxu1 %v3341_v26  ;;  %3115 = vmatprep.mubr.msk.f32.mxu0 %vm280_vm7, %v4192_v56 }
 0x2c2   :  { %3344 = vmatpush3.bf16.msra.mxu1 %v3341_v26  ;;  %v4216_v26 = vsel %vm479_vm10, 1.0, %v3764_v2 }
 0x2c5   :  { %3080 = vmatmul.mubr.msk.f32.vlgmr.msra.gmra.mrb[4].mxu1 %vm372_vm1, %v4146_v28 }
 0x2c6   :  { %3082 = vmatprep.mubr.msk.f32.mxu1 %vm372_vm1, %v4149_v30 }
 0x2c9   :  { %3083 = vmatmul.mubr.msk.f32.gmra.mrb[6].mxu1 %vm372_vm1, %v4157_v31 }
 0x2ca   :  { %3104 = vmatprep.mubr.msk.f32.mxu1 %vm280_vm7, %v4192_v56 }
 0x328   :  { %v3071_v34 = vpop.f32.mrb[4].mxu0 }
 0x329   :  { %v734_v36 = vmul.f32 %v3071_v34, %v4163_v33  ;;  %v714_v37 = vpop.f32.mrb[5].mxu0  ;;  %v1131_v34 = vld [vmem:[#allocation7 + $0x20] sm:$0xff] }
 0x32a   :  { %v733_v44 = vmul.f32 %v714_v37, %v4168_v42 }
 0x32b   :  { %933 = vperm.xlu0 %3528, %v734_v36   ;;  %1040 = vperm.xlu1 %3530, %v734_v36  }
 0x32c   :  { %v3074_v39 = vpop.f32.mrb[6].mxu0 }
 0x32d   :  { %v724_v43 = vpop.f32.mrb[7].mxu0  ;;  %v736_v47 = vmul.f32 %v3074_v39, %v4175_v46 }
 0x32e   :  { %v735_v49 = vmul.f32 %v724_v43, %v4180_v48  ;;  %v3369_v43 = vpack.c.bf16 %v1132_v35, %v1131_v34 }
 0x32f   :  { %3531 = vset.pattern.permute.xlu0 %v3765_v19  ;;  %3532 = vset.pattern.permute.xlu1 %v3761_v0 }
 0x330   :  { %928 = vperm.xlu1 %3532, %v733_v44   ;;  %1036 = vperm.xlu0 %3531, %v733_v44  }
 0x334   :  { %943 = vperm.xlu1 %3532, %v736_v47   ;;  %1048 = vperm.xlu0 %3531, %v736_v47  }
 0x338   :  { %3534 = vset.pattern.permute.xlu1 %v3765_v19  ;;  %3533 = vset.pattern.permute.xlu0 %v3766_v50 }
 0x339   :  { %1298 = vperm.xlu0 %3533, %v733_v44   ;;  %1044 = vperm.xlu1 %3534, %v735_v49  }
 0x33d   :  { %1310 = vperm.xlu0 %3533, %v736_v47   ;;  %3535 = vset.pattern.permute.xlu1 %v3766_v50 }
 0x33e   :  { %1302 = vperm.xlu1 %3535, %v734_v36  }
 0x341   :  { %3538 = vset.pattern.permute.xlu0 %v3767_v54 }
 0x342   :  { %1485 = vperm.xlu0 %3538, %v734_v36   ;;  %3536 = vset.pattern.permute.xlu1 %v3761_v0 }
 0x343   :  { %938 = vperm.xlu1 %3536, %v735_v49  }
 0x346   :  { %3541 = vset.pattern.permute.xlu0 %v3765_v19 }
 0x347   :  { %3537 = vset.pattern.permute.xlu1 %v3767_v54 }
 0x348   :  { %1481 = vperm.xlu1 %3537, %v733_v44   ;;  %v1133_v44 = vld [vmem:[#allocation7 + $0x30] sm:$0xff] }
 0x349   :  { %v3373_v41 = vpack.c.bf16 %v1134_v45, %v1133_v44 }
 0x34c   :  { %3539 = vset.pattern.permute.xlu1 %v3766_v50 }
 0x34d   :  { %1306 = vperm.xlu1 %3539, %v735_v49  }
 0x351   :  { %3540 = vset.pattern.permute.xlu1 %v3767_v54 }
 0x352   :  { %1489 = vperm.xlu1 %3540, %v735_v49  }
 0x356   :  { %1493 = vperm.xlu1 %3540, %v736_v47  }
 0x35a   :  { %3542 = vset.pattern.permute.xlu1 %v3765_v19 }
 0x393   :  { %v4204_v40 = vpop.f32.mrb[8].mxu0 }
 0x394   :  { %v4206_v57 = vpop.f32.mrb[9].mxu0 }
 0x398   :  { %v3081_v58 = vpop.f32.mrb[4].mxu1 }
 0x399   :  { %v815_v60 = vpop.f32.mrb[5].mxu1 }
 0x39c   :  { %v4208_v61 = vpop.f32.mrb[6].mxu1 }
 0x39d   :  { %v4210_v62 = vpop.f32.mrb[7].mxu1 }
 0x3aa   :  { %v1041_v63 = vpop.permute.xlu1 %1040  ;;  %v934_v3 = vpop.permute.xlu0 %933 }
 0x3ab   :  { %v1052_v6 = vmul.f32 %v3081_v58, %v1041_v63  ;;  %v947_v7 = vmul.f32 %v3081_v58, %v934_v3 }
 0x3af   :  { %v929_v4 = vpop.permute.xlu1 %928  ;;  %v1037_v5 = vpop.permute.xlu0 %1036 }
 0x3b0   :  { %v946_v8 = vmul.f32 %v929_v4, %v815_v60  ;;  %v1051_v9 = vmul.f32 %v1037_v5, %v815_v60 }
 0x3b2   :  { %v3353_v10 = vpack.c.bf16 %v947_v7, %v946_v8  ;;  %v3361_v11 = vpack.c.bf16 %v1052_v6, %v1051_v9  ;;  %v1669_v9 = vld [vmem:[#allocation11] sm:$0xff] }
 0x3b3   :  { %v944_v12 = vpop.permute.xlu1 %943  ;;  %v1049_v13 = vpop.permute.xlu0 %1048 }
 0x3b4   :  { %3354 = vmatprep.subr.bf16.mxu1 %v3353_v10  ;;  %3362 = vmatprep.subr.bf16.mxu0 %v3361_v11  ;;  %v1054_v16 = vmul.f32 %v4208_v61, %v1049_v13  ;;  %v949_v36 = vmul.f32 %v4208_v61, %v944_v12  ;;  %v1671_v12 = vld [vmem:[#allocation11 + $0x10] sm:$0xff]  ;;  %v1672_v13 = vld [vmem:[#allocation11 + $0x18] sm:$0xff] }
 0x3b5   :  { %3356 = vmatpush3.bf16.msra.mxu1 %v3353_v10  ;;  %3364 = vmatpush3.bf16.msra.mxu0 %v3361_v11  ;;  %v1670_v10 = vld [vmem:[#allocation11 + $0x8] sm:$0xff] }
 0x3b6   :  { %v3418_v11 = vpack.c.bf16 %v1670_v10, %v1669_v9  ;;  %v1935_v9 = vld [vmem:[#allocation10 + $0x10] sm:$0xff]  ;;  %v1936_v10 = vld [vmem:[#allocation10 + $0x18] sm:$0xff] }
 0x3b8   :  { %v1045_v14 = vpop.permute.xlu1 %1044  ;;  %v1299_v21 = vpop.permute.xlu0 %1298 }
 0x3b9   :  { %v1053_v20 = vmul.f32 %v1045_v14, %v4210_v62  ;;  %v1313_v24 = vmul.f32 %v1299_v21, %v815_v60  ;;  %v1032_v14 = vld [vmem:[#allocation7 + $0x8] sm:$0xff]  ;;  %v530_v21 = vsel %vm280_vm7, %v4192_v56, 0.0 }
 0x3ba   :  { %531 = vadd.xlane.f32.xlu0 %v530_v21 }
 0x3bb   :  { %v3365_v22 = vpack.c.bf16 %v1054_v16, %v1053_v20  ;;  %v533_v20 = vsel %vm280_vm7, %v4216_v26, 0.0 }
 0x3bc   :  { %v1311_v27 = vpop.permute.xlu0 %1310  ;;  %534 = vadd.xlane.f32.xlu1 %v533_v20 }
 0x3bd   :  { %v1303_v23 = vpop.permute.xlu1 %1302  ;;  %3366 = vmatprep.subr.bf16.mxu0 %v3365_v22  ;;  %v1316_v3 = vmul.f32 %v4208_v61, %v1311_v27  ;;  %v1395_v27 = vld [vmem:[#allocation7 + $0x50] sm:$0xff] }
 0x3be   :  { %v1314_v25 = vmul.f32 %v3081_v58, %v1303_v23  ;;  %3368 = vmatpush3.bf16.msra.mxu0 %v3365_v22 }
 0x3c0   :  { %v3385_v29 = vpack.c.bf16 %v1314_v25, %v1313_v24  ;;  %v1394_v24 = vld [vmem:[#allocation7 + $0x48] sm:$0xff] }
 0x3c1   :  { %3116 = vmatmul.mubr.msk.f32.vlgmr.msra.gmra.mrb[10].mxu0 %vm280_vm7, %v4216_v26  ;;  %v1486_v38 = vpop.permute.xlu0 %1485 }
 0x3c2   :  { %v939_v32 = vpop.permute.xlu1 %938  ;;  %3386 = vmatprep.subr.bf16.mxu0 %v3385_v29  ;;  %3148 = vmatprep.mubr.msk.f32.mxu0 %vm280_vm7, %v4192_v56  ;;  %v1497_v49 = vmul.f32 %v3081_v58, %v1486_v38 }
 0x3c3   :  { %v948_v37 = vmul.f32 %v939_v32, %v4210_v62  ;;  %3388 = vmatpush3.bf16.msra.mxu0 %v3385_v29  ;;  %v1396_v29 = vld [vmem:[#allocation7 + $0x58] sm:$0xff] }
 0x3c4   :  { %v3397_v35 = vpack.c.bf16 %v1396_v29, %v1395_v27 }
 0x3c5   :  { %v3357_v39 = vpack.c.bf16 %v949_v36, %v948_v37  ;;  %v1576_v36 = vld [vmem:[#allocation7 + $0x60] sm:$0xff]  ;;  %v1577_v37 = vld [vmem:[#allocation7 + $0x68] sm:$0xff] }
 0x3c6   :  { %v3409_v38 = vpack.c.bf16 %v1577_v37, %v1576_v36 }
 0x3c7   :  { %v1482_v47 = vpop.permute.xlu1 %1481  ;;  %3358 = vmatprep.subr.bf16.mxu1 %v3357_v39 }
 0x3c8   :  { %v1496_v51 = vmul.f32 %v1482_v47, %v815_v60  ;;  %3360 = vmatpush3.bf16.msra.mxu1 %v3357_v39  ;;  %v1578_v39 = vld [vmem:[#allocation7 + $0x70] sm:$0xff] }
 0x3c9   :  { %3370 = vmatprep.subr.bf16.mxu1 %v3369_v43 }
 0x3ca   :  { %v3401_v52 = vpack.c.bf16 %v1497_v49, %v1496_v51 }
 0x3cb   :  { %3105 = vmatmul.mubr.msk.f32.vlgmr.msra.gmra.mrb[8].mxu1 %vm280_vm7, %v4216_v26 }
 0x3cc   :  { %v1307_v63 = vpop.permute.xlu1 %1306  ;;  %3372 = vmatpush3.bf16.msra.mxu1 %v3369_v43  ;;  %v1579_v43 = vld [vmem:[#allocation7 + $0x78] sm:$0xff] }
 0x3cd   :  { %v1315_v4 = vmul.f32 %v1307_v63, %v4210_v62  ;;  %3374 = vmatprep.subr.bf16.mxu1 %v3373_v41  ;;  %v3413_v47 = vpack.c.bf16 %v1579_v43, %v1578_v39 }
 0x3cf   :  { %v3389_v5 = vpack.c.bf16 %v1316_v3, %v1315_v4 }
 0x3d0   :  { %3376 = vmatpush3.bf16.msra.mxu1 %v3373_v41  ;;  %v2821_v41 = vld [vmem:[#allocation13] ss:$0 sm:$0xff] }
 0x3d1   :  { %v1490_v6 = vpop.permute.xlu1 %1489  ;;  %3390 = vmatprep.subr.bf16.mxu0 %v3389_v5 }
 0x3d2   :  { %3392 = vmatpush3.bf16.msra.mxu0 %v3389_v5  ;;  %v1498_v60 = vmul.f32 %v1490_v6, %v4210_v62  ;;  %v3421_v62 = vpack.c.bf16 %v1672_v13, %v1671_v12 }
 0x3d3   :  { %3402 = vmatprep.subr.bf16.mxu0 %v3401_v52 }
 0x3d5   :  { %v1494_v58 = vpop.permute.xlu1 %1493  ;;  %3149 = vmatmul.mubr.msk.f32.vlgmr.msra.gmra.mrb[12].mxu0 %vm280_vm7, %v4216_v26 }
 0x3d6   :  { %v1499_v7 = vmul.f32 %v4208_v61, %v1494_v58  ;;  %3404 = vmatpush3.bf16.msra.mxu0 %v3401_v52  ;;  %3170 = vmatprep.mubr.msk.f32.mxu0 %vm280_vm7, %v4192_v56  ;;  %v1031_v61 = vld [vmem:[#allocation7] sm:$0xff] }
 0x3d7   :  { %v3377_v16 = vpack.c.bf16 %v1032_v14, %v1031_v61 }
 0x3d8   :  { %v3405_v8 = vpack.c.bf16 %v1499_v7, %v1498_v60  ;;  %v1934_v7 = vld [vmem:[#allocation10 + $0x8] sm:$0xff] }
 0x3d9   :  { %3378 = vmatprep.subr.bf16.mxu1 %v3377_v16 }
 0x3da   :  { %3406 = vmatprep.subr.bf16.mxu0 %v3405_v8 }
 0x3db   :  { %3408 = vmatpush3.bf16.msra.mxu0 %v3405_v8 }
 0x3dc   :  { %3417 = vmatprep.subr.bf16.mxu0 %v3762_v1 }
 0x3de   :  { %3171 = vmatmul.mubr.msk.f32.vlgmr.msra.gmra.mrb[14].mxu0 %vm280_vm7, %v4216_v26 }
 0x3df   :  { %3419 = vmatpush3.bf16.msra.mxu0 %v3418_v11  ;;  %3192 = vmatprep.mubr.msk.f32.mxu0 %vm3763_vm0, %v3764_v2  ;;  %v1034_v2 = vld [vmem:[#allocation7 + $0x18] sm:$0xff]  ;;  %v3431_v11 = vpack.c.bf16 %v1936_v10, %v1935_v9  ;;  %v2839_v9 = vld [vmem:[%s4417_s17 + $0x20] sm:$0xff]  ;;  %v2840_v10 = vld [vmem:[%s4417_s17 + $0x28] sm:$0xff] }
 0x3e0   :  { %3420 = vmatprep.subr.bf16.mxu0 %v3762_v1  ;;  %v1033_v1 = vld [vmem:[#allocation7 + $0x10] sm:$0xff] }
 0x3e3   :  { %3422 = vmatpush3.bf16.msra.mxu0 %v3421_v62 }
 0x3e6   :  { %3193 = vmatmul.mubr.msk.f32.vlgmr.msra.gmra.mrb[16].mxu0 %vm280_vm7, %v4097_v53  ;;  %v3381_v53 = vpack.c.bf16 %v1034_v2, %v1033_v1 }
 0x3e7   :  { %3197 = vmatprep.mubr.msk.f32.mxu0 %vm632_vm9, %v4108_v59  ;;  %v1393_v59 = vld [vmem:[#allocation7 + $0x40] sm:$0xff] }
 0x3e8   :  { %v3393_v25 = vpack.c.bf16 %v1394_v24, %v1393_v59 }
 0x447   :  { %v532_v13 = vpop.xlane.xlu0 %531 }
 0x449   :  { %v535_v12 = vpop.xlane.xlu1 %534 }
 0x44a   :  { %v537_v62 = vmax.f32 %v535_v12, 1.0 }
 0x494   :  { %v3117_v22 = vpop.f32.mrb[10].mxu0 }
 0x495   :  { %v1121_v23 = vpop.f32.mrb[11].mxu0 }
 0x496   :  { %3126 = vmatprep.mubr.msk.f32.mxu1 %vm280_vm7, %v1121_v23 }
 0x497   :  { %3127 = vmatmul.mubr.msk.f32.vlgmr.msra.gmra.mrb[10].mxu1 %vm280_vm7, %v3117_v22 }
 0x498   :  { %3380 = vmatpush3.bf16.msra.mxu1 %v3377_v16 }
 0x499   :  { %3382 = vmatprep.subr.bf16.mxu1 %v3381_v53 }
 0x49c   :  { %3384 = vmatpush3.bf16.msra.mxu1 %v3381_v53 }
 0x49d   :  { %3394 = vmatprep.subr.bf16.mxu1 %v3393_v25 }
 0x49e   :  { %v3106_v32 = vpop.f32.mrb[8].mxu1 }
 0x49f   :  { %v1022_v34 = vpop.f32.mrb[9].mxu1 }
 0x4a0   :  { %3137 = vmatprep.mubr.msk.f32.mxu1 %vm280_vm7, %v1022_v34 }
 0x4a1   :  { %3138 = vmatmul.mubr.msk.f32.vlgmr.msra.gmra.mrb[10].mxu1 %vm280_vm7, %v3106_v32 }
 0x4a2   :  { %3396 = vmatpush3.bf16.msra.mxu1 %v3393_v25 }
 0x4a3   :  { %3398 = vmatprep.subr.bf16.mxu1 %v3397_v35 }
 0x4a6   :  { %3400 = vmatpush3.bf16.msra.mxu1 %v3397_v35 }
 0x4a7   :  { %3410 = vmatprep.subr.bf16.mxu1 %v3409_v38 }
 0x4a8   :  { %v3150_v44 = vpop.f32.mrb[12].mxu0 }
 0x4a9   :  { %v1383_v45 = vpop.f32.mrb[13].mxu0 }
 0x4aa   :  { %3159 = vmatprep.mubr.msk.f32.mxu1 %vm280_vm7, %v1383_v45 }
 0x4ab   :  { %3160 = vmatmul.mubr.msk.f32.vlgmr.msra.gmra.mrb[10].mxu1 %vm280_vm7, %v3150_v44 }
 0x4ac   :  { %3412 = vmatpush3.bf16.msra.mxu1 %v3409_v38 }
 0x4ad   :  { %3414 = vmatprep.subr.bf16.mxu1 %v3413_v47 }
 0x4b0   :  { %3416 = vmatpush3.bf16.msra.mxu1 %v3413_v47 }
 0x4b1   :  { %v3172_v49 = vpop.f32.mrb[14].mxu0 }
 0x4b2   :  { %v1566_v51 = vpop.f32.mrb[15].mxu0 }
 0x4b3   :  { %3181 = vmatprep.mubr.msk.f32.mxu1 %vm280_vm7, %v1566_v51 }
 0x4b4   :  { %3182 = vmatmul.mubr.msk.f32.vlgmr.msra.gmra.mrb[10].mxu1 %vm280_vm7, %v3172_v49 }
 0x4b5   :  { %3207 = vmatprep.mubr.msk.f32.mxu1 %vm372_vm1, %v4100_v55  ;;  %v1933_v55 = vld [vmem:[#allocation10] sm:$0xff] }
 0x4b6   :  { %v3427_v8 = vpack.c.bf16 %v1934_v7, %v1933_v55 }
 0x4b9   :  { %v1746_v52 = vpop.f32.mrb[16].mxu0 }
 0x4ba   :  { %v1747_v63 = vadd.f32 %v2821_v41, %v1746_v52  ;;  %v3194_v3 = vpop.f32.mrb[17].mxu0 }
 0x4bc   :  { %v1750_v4 = vsub.f32 0.0, %v1747_v63 }
 0x4be   :  { %v1751_v5 = vmul.f32 1.442695, %v1750_v4 }
 0x4c0   :  { %3558 = vpow2.f32 %v1751_v5 }
 0x4ca   :  { %v3559_v6 = vpop.eup %3558 }
 0x4cb   :  { %v1753_v58 = vadd.f32 1.0, %v3559_v6 }
 0x4cd   :  { %3560 = vrcp.f32 %v1753_v58 }
 0x4ce   :  { %3562 = vrcp.f32 %v537_v62 }
 0x4d7   :  { %v3561_v60 = vpop.eup %3560 }
 0x4d8   :  { %3195 = vmatprep.subr.msk.mxu0 %vm190_vm2, %v3561_v60 }
 0x4d9   :  { %3196 = vmatpush3.msk.msra.mxu0 %vm190_vm2, %v3561_v60 }
 0x4da   :  { %3198 = vmatmul.mubr.msk.f32.vlgmr.msra.gmra.mrb[18].mxu0 %vm632_vm9, %v4121_v15  ;;  %3428 = vmatprep.subr.bf16.mxu0 %v3427_v8  ;;  %v536_v15 = vmax.f32 %v532_v13, 1.0 }
 0x4db   :  { %3200 = vmatprep.mubr.msk.f32.mxu0 %vm632_vm9, %v4125_v17  ;;  %3430 = vmatpush3.bf16.msra.mxu0 %v3427_v8  ;;  %v4266_v17 = vpop.eup %3562 }
 0x4dc   :  { %3432 = vmatprep.subr.bf16.mxu0 %v3431_v11  ;;  %3564 = vrcp.f32 %v536_v15 }
 0x4de   :  { %3201 = vmatmul.mubr.msk.f32.gmra.mrb[20].mxu0 %vm632_vm9, %v4133_v18  ;;  %v2802_v18 = vld [vmem:[%s4413_s13] ss:$0 sm:$0xff] }
 0x4df   :  { %3434 = vmatpush3.bf16.msra.mxu0 %v3431_v11  ;;  %v923_v16 = vadd.f32 %v4204_v40, %v2802_v18  ;;  %v918_v1 = vadd.f32 %v2802_v18, %v4206_v57 }
 0x4e6   :  { %v4271_v61 = vpop.eup %3564 }
 0x587   :  { %v3183_v14 = vpop.f32.mrb[10].mxu1 }
 0x588   :  { %v1664_v20 = vmul.f32 %v4266_v17, %v3183_v14  ;;  %v1652_v21 = vpop.f32.mrb[11].mxu1 }
 0x589   :  { %v1663_v2 = vmul.f32 %v4271_v61, %v1652_v21  ;;  %v3451_v21 = vpack.c.bf16 %v2840_v10, %v2839_v9 }
 0x58a   :  { %v1666_v22 = vadd.f32 %v1664_v20, %v923_v16 }
 0x58b   :  { %v1665_v23 = vadd.f32 %v1663_v2, %v918_v1 }
 0x58c   :  { %v1668_v53 = vmax.f32 %v1666_v22, 0.0 }
 0x58d   :  { %v1667_v59 = vmax.f32 %v1665_v23, 0.0 }
 0x58f   :  { %3221 = vmatprep.mubr.msk.f32.mxu0 %vm280_vm7, %v1667_v59  ;;  %v3423_v24 = vpack.c.bf16 %v1668_v53, %v1667_v59  ;;  %v2842_v59 = vld [vmem:[%s4417_s17 + $0x38] sm:$0xff] }
 0x590   :  { %3222 = vmatmul.mubr.msk.f32.vlgmr.msra.gmra.mrb[22].mxu0 %vm280_vm7, %v1668_v53  ;;  %v2841_v53 = vld [vmem:[%s4417_s17 + $0x30] sm:$0xff] }
 0x591   :  { %3424 = vmatprep.subr.bf16.mxu1 %v3423_v24  ;;  %3243 = vmatprep.mubr.msk.f32.mxu0 %vm280_vm7, %v4192_v56 }
 0x592   :  { %3426 = vmatpush3.bf16.msra.mxu1 %v3423_v24  ;;  %v3455_v24 = vpack.c.bf16 %v2842_v59, %v2841_v53 }
 0x595   :  { %3208 = vmatmul.mubr.msk.f32.vlgmr.msra.gmra.mrb[12].mxu1 %vm372_vm1, %v4146_v28 }
 0x596   :  { %3210 = vmatprep.mubr.msk.f32.mxu1 %vm372_vm1, %v4149_v30 }
 0x599   :  { %3211 = vmatmul.mubr.msk.f32.gmra.mrb[14].mxu1 %vm372_vm1, %v4157_v31 }
 0x59a   :  { %3232 = vmatprep.mubr.msk.f32.mxu1 %vm280_vm7, %v4192_v56 }
 0x5ad   :  { %v3199_v40 = vpop.f32.mrb[18].mxu0 }
 0x5ae   :  { %v1845_v57 = vmul.f32 %v3199_v40, %v4163_v33  ;;  %v1825_v25 = vpop.f32.mrb[19].mxu0  ;;  %v2124_v40 = vld [vmem:[%s4417_s17] sm:$0xff] }
 0x5af   :  { %v1844_v27 = vmul.f32 %v1825_v25, %v4168_v42 }
 0x5b0   :  { %2133 = vperm.xlu1 %3542, %v1845_v57  }
 0x5b1   :  { %2129 = vperm.xlu0 %3541, %v1844_v27   ;;  %v3202_v29 = vpop.f32.mrb[20].mxu0 }
 0x5b2   :  { %v1835_v32 = vpop.f32.mrb[21].mxu0  ;;  %v1847_v28 = vmul.f32 %v3202_v29, %v4175_v46 }
 0x5b3   :  { %v1846_v30 = vmul.f32 %v1835_v32, %v4180_v48 }
 0x5b4   :  { %3543 = vset.pattern.permute.xlu1 %v3761_v0 }
 0x5b5   :  { %2032 = vperm.xlu1 %3543, %v1845_v57   ;;  %3544 = vset.pattern.permute.xlu0 %v3766_v50 }
 0x5b6   :  { %2391 = vperm.xlu0 %3544, %v1844_v27  }
 0x5b9   :  { %2027 = vperm.xlu1 %3543, %v1844_v27  }
 0x5ba   :  { %2403 = vperm.xlu0 %3544, %v1847_v28  }
 0x5bd   :  { %3545 = vset.pattern.permute.xlu1 %v3765_v19 }
 0x5be   :  { %3552 = vset.pattern.permute.xlu0 %v3767_v54  ;;  %2141 = vperm.xlu1 %3545, %v1847_v28  }
 0x5bf   :  { %2578 = vperm.xlu0 %3552, %v1845_v57  }
 0x5c2   :  { %3546 = vset.pattern.permute.xlu1 %v3761_v0 }
 0x5c3   :  { %2042 = vperm.xlu1 %3546, %v1847_v28  }
 0x5c7   :  { %3547 = vset.pattern.permute.xlu1 %v3765_v19 }
 0x5c8   :  { %2137 = vperm.xlu1 %3547, %v1846_v30  }
 0x5cc   :  { %3548 = vset.pattern.permute.xlu1 %v3766_v50 }
 0x5cd   :  { %2395 = vperm.xlu1 %3548, %v1845_v57   ;;  %v2125_v57 = vld [vmem:[%s4417_s17 + $0x8] sm:$0xff] }
 0x5ce   :  { %v3459_v25 = vpack.c.bf16 %v2125_v57, %v2124_v40 }
 0x5d1   :  { %3549 = vset.pattern.permute.xlu1 %v3761_v0 }
 0x5d2   :  { %2037 = vperm.xlu1 %3549, %v1846_v30  }
 0x5d6   :  { %3550 = vset.pattern.permute.xlu1 %v3767_v54 }
 0x5d7   :  { %2574 = vperm.xlu1 %3550, %v1844_v27   ;;  %v2126_v27 = vld [vmem:[%s4417_s17 + $0x10] sm:$0xff] }
 0x5db   :  { %3551 = vset.pattern.permute.xlu1 %v3766_v50 }
 0x5dc   :  { %2399 = vperm.xlu1 %3551, %v1846_v30  }
 0x5e0   :  { %3553 = vset.pattern.permute.xlu1 %v3767_v54 }
 0x5e1   :  { %2582 = vperm.xlu1 %3553, %v1846_v30  }
 0x5e5   :  { %2586 = vperm.xlu1 %3553, %v1847_v28  }
 0x62f   :  { %v2134_v31 = vpop.permute.xlu1 %2133 }
 0x630   :  { %v2130_v0 = vpop.permute.xlu0 %2129 }
 0x634   :  { %v2033_v33 = vpop.permute.xlu1 %2032 }
 0x635   :  { %v2392_v37 = vpop.permute.xlu0 %2391 }
 0x638   :  { %v2028_v19 = vpop.permute.xlu1 %2027 }
 0x639   :  { %v2404_v39 = vpop.permute.xlu0 %2403 }
 0x63d   :  { %v2142_v42 = vpop.permute.xlu1 %2141 }
 0x63e   :  { %v2579_v44 = vpop.permute.xlu0 %2578 }
 0x642   :  { %v2043_v46 = vpop.permute.xlu1 %2042 }
 0x647   :  { %v2138_v48 = vpop.permute.xlu1 %2137 }
 0x64c   :  { %v2396_v34 = vpop.permute.xlu1 %2395 }
 0x651   :  { %v2038_v35 = vpop.permute.xlu1 %2037 }
 0x656   :  { %v2575_v36 = vpop.permute.xlu1 %2574 }
 0x65b   :  { %v2400_v38 = vpop.permute.xlu1 %2399 }
 0x660   :  { %v2583_v54 = vpop.permute.xlu1 %2582 }
 0x663   :  { %v4304_v43 = vpop.f32.mrb[22].mxu0 }
 0x664   :  { %v4306_v50 = vpop.f32.mrb[23].mxu0  ;;  %v2587_v6 = vpop.permute.xlu1 %2586 }
 0x668   :  { %v3209_v45 = vpop.f32.mrb[12].mxu1 }
 0x669   :  { %v2046_v47 = vmul.f32 %v3209_v45, %v2033_v33  ;;  %v2145_v49 = vmul.f32 %v3209_v45, %v2134_v31  ;;  %v2407_v51 = vmul.f32 %v3209_v45, %v2396_v34  ;;  %v2590_v41 = vmul.f32 %v3209_v45, %v2579_v44  ;;  %v1914_v52 = vpop.f32.mrb[13].mxu1  ;;  %v2849_v31 = vld [vmem:[%s4417_s17 + $0x40] sm:$0xff]  ;;  %v2850_v33 = vld [vmem:[%s4417_s17 + $0x48] sm:$0xff] }
 0x66a   :  { %v2045_v63 = vmul.f32 %v2028_v19, %v1914_v52  ;;  %v2144_v3 = vmul.f32 %v2130_v0, %v1914_v52  ;;  %v2406_v4 = vmul.f32 %v2392_v37, %v1914_v52  ;;  %v2589_v5 = vmul.f32 %v2575_v36, %v1914_v52  ;;  %v2857_v0 = vld [vmem:[%s4417_s17 + $0x60] sm:$0xff]  ;;  %v2858_v36 = vld [vmem:[%s4417_s17 + $0x68] sm:$0xff] }
 0x66b   :  { %v3475_v19 = vpack.c.bf16 %v2850_v33, %v2849_v31  ;;  %v3491_v37 = vpack.c.bf16 %v2858_v36, %v2857_v0 }
 0x66c   :  { %v3212_v58 = vpop.f32.mrb[14].mxu1  ;;  %v3435_v60 = vpack.c.bf16 %v2046_v47, %v2045_v63  ;;  %v3443_v55 = vpack.c.bf16 %v2145_v49, %v2144_v3  ;;  %v3467_v7 = vpack.c.bf16 %v2407_v51, %v2406_v4  ;;  %v3483_v8 = vpack.c.bf16 %v2590_v41, %v2589_v5  ;;  %v2832_v47 = vld [vmem:[%s4418_s18] ss:$0 sm:$0xff] }
 0x66d   :  { %v2048_v11 = vmul.f32 %v3212_v58, %v2043_v46  ;;  %v2147_v12 = vmul.f32 %v3212_v58, %v2142_v42  ;;  %v2409_v13 = vmul.f32 %v3212_v58, %v2404_v39  ;;  %v2592_v62 = vmul.f32 %v3212_v58, %v2587_v6  ;;  %v1924_v15 = vpop.f32.mrb[15].mxu1  ;;  %v2851_v42 = vld [vmem:[%s4417_s17 + $0x50] sm:$0xff]  ;;  %v2852_v46 = vld [vmem:[%s4417_s17 + $0x58] sm:$0xff] }
 0x66e   :  { %v2047_v18 = vmul.f32 %v2038_v35, %v1924_v15  ;;  %v2146_v14 = vmul.f32 %v2138_v48, %v1924_v15  ;;  %v2408_v16 = vmul.f32 %v2400_v38, %v1924_v15  ;;  %v2591_v20 = vmul.f32 %v2583_v54, %v1924_v15  ;;  %3436 = vmatprep.subr.bf16.mxu1 %v3435_v60  ;;  %v2859_v38 = vld [vmem:[%s4417_s17 + $0x70] sm:$0xff]  ;;  %v2860_v39 = vld [vmem:[%s4417_s17 + $0x78] sm:$0xff] }
 0x66f   :  { %3444 = vmatprep.subr.bf16.mxu0 %v3443_v55  ;;  %3438 = vmatpush3.bf16.msra.mxu1 %v3435_v60  ;;  %v3479_v34 = vpack.c.bf16 %v2852_v46, %v2851_v42  ;;  %v3495_v44 = vpack.c.bf16 %v2860_v39, %v2859_v38  ;;  %v2022_v51 = vadd.f32 %v4304_v43, %v2832_v47 }
 0x670   :  { %3446 = vmatpush3.bf16.msra.mxu0 %v3443_v55  ;;  %v3439_v1 = vpack.c.bf16 %v2048_v11, %v2047_v18  ;;  %v3447_v2 = vpack.c.bf16 %v2147_v12, %v2146_v14  ;;  %v3471_v22 = vpack.c.bf16 %v2409_v13, %v2408_v16  ;;  %v3487_v23 = vpack.c.bf16 %v2592_v62, %v2591_v20 }
 0x671   :  { %v2017_v63 = vadd.f32 %v2832_v47, %v4306_v50 }
 0x672   :  { %3440 = vmatprep.subr.bf16.mxu1 %v3439_v1  ;;  %3448 = vmatprep.subr.bf16.mxu0 %v3447_v2 }
 0x673   :  { %3442 = vmatpush3.bf16.msra.mxu1 %v3439_v1 }
 0x674   :  { %3450 = vmatpush3.bf16.msra.mxu0 %v3447_v2  ;;  %3452 = vmatprep.subr.bf16.mxu1 %v3451_v21 }
 0x675   :  { %3468 = vmatprep.subr.bf16.mxu0 %v3467_v7 }
 0x676   :  { %3233 = vmatmul.mubr.msk.f32.vlgmr.msra.gmra.mrb[16].mxu1 %vm280_vm7, %v4216_v26 }
 0x677   :  { %3244 = vmatmul.mubr.msk.f32.vlgmr.msra.gmra.mrb[24].mxu0 %vm280_vm7, %v4216_v26  ;;  %3454 = vmatpush3.bf16.msra.mxu1 %v3451_v21 }
 0x678   :  { %3470 = vmatpush3.bf16.msra.mxu0 %v3467_v7  ;;  %3276 = vmatprep.mubr.msk.f32.mxu0 %vm280_vm7, %v4192_v56 }
 0x679   :  { %3472 = vmatprep.subr.bf16.mxu0 %v3471_v22  ;;  %3456 = vmatprep.subr.bf16.mxu1 %v3455_v24 }
 0x67b   :  { %3458 = vmatpush3.bf16.msra.mxu1 %v3455_v24 }
 0x67c   :  { %3474 = vmatpush3.bf16.msra.mxu0 %v3471_v22  ;;  %3460 = vmatprep.subr.bf16.mxu1 %v3459_v25 }
 0x67d   :  { %3484 = vmatprep.subr.bf16.mxu0 %v3483_v8 }
 0x67f   :  { %3277 = vmatmul.mubr.msk.f32.vlgmr.msra.gmra.mrb[26].mxu0 %vm280_vm7, %v4216_v26 }
 0x680   :  { %3486 = vmatpush3.bf16.msra.mxu0 %v3483_v8  ;;  %3298 = vmatprep.mubr.msk.f32.mxu0 %vm280_vm7, %v4192_v56  ;;  %v2127_v56 = vld [vmem:[%s4417_s17 + $0x18] sm:$0xff]  ;;  %s3768_s17 = smov [#allocation14]  }
 0x681   :  { %3488 = vmatprep.subr.bf16.mxu0 %v3487_v23  ;;  %v3463_v30 = vpack.c.bf16 %v2127_v56, %v2126_v27  ;;  %s2767_s11 = sshll.u32 %s3768_s17, 4  ;;  %s2768_s11 = int_to_ptr.vmem [resolvable:$true] %s2767_s11 }
 0x682   :  { %s3720_s18 = scalar_lea.vmem %s2768_s11, 256  ;;  %p3725_p1 = scmp.lt.s32.totalorder %s2768_s11, %s2768_s11 }
 0x683   :  { %p3721_p0 = scmp.ne.s32.totalorder %s2768_s11, %s3720_s18  ;;  %p3726_p2 = scmp.lt.s32.totalorder %s3720_s18, %s3720_s18 }
 0x684   :  { %3490 = vmatpush3.bf16.msra.mxu0 %v3487_v23 }
 0x685   :  { %p3727_p3 = por %p3726_p2, %p3725_p1 }
 0x687   :  { %3299 = vmatmul.mubr.msk.f32.vlgmr.msra.gmra.mrb[28].mxu0 %vm280_vm7, %v4216_v26  ;;  %p3728_p4 = pnand %p3727_p3, %p3721_p0 }
 0x749   :  { %v3234_v29 = vpop.f32.mrb[16].mxu1 }
 0x74a   :  { %v3245_v26 = vpop.f32.mrb[24].mxu0  ;;  %v2115_v32 = vpop.f32.mrb[17].mxu1 }
 0x74b   :  { %v2214_v28 = vpop.f32.mrb[25].mxu0 }
 0x74c   :  { %3254 = vmatprep.mubr.msk.f32.mxu1 %vm280_vm7, %v2214_v28 }
 0x74d   :  { %3255 = vmatmul.mubr.msk.f32.vlgmr.msra.gmra.mrb[18].mxu1 %vm280_vm7, %v3245_v26 }
 0x74e   :  { %3462 = vmatpush3.bf16.msra.mxu1 %v3459_v25  ;;  %3265 = vmatprep.mubr.msk.f32.mxu1 %vm280_vm7, %v2115_v32 }
 0x74f   :  { %3464 = vmatprep.subr.bf16.mxu1 %v3463_v30 }
 0x752   :  { %3466 = vmatpush3.bf16.msra.mxu1 %v3463_v30  ;;  %v3278_v48 = vpop.f32.mrb[26].mxu0 }
 0x753   :  { %3476 = vmatprep.subr.bf16.mxu1 %v3475_v19  ;;  %v2476_v35 = vpop.f32.mrb[27].mxu0 }
 0x755   :  { %3266 = vmatmul.mubr.msk.f32.vlgmr.msra.gmra.mrb[18].mxu1 %vm280_vm7, %v3234_v29 }
 0x756   :  { %3478 = vmatpush3.bf16.msra.mxu1 %v3475_v19  ;;  %3287 = vmatprep.mubr.msk.f32.mxu1 %vm280_vm7, %v2476_v35 }
 0x757   :  { %3480 = vmatprep.subr.bf16.mxu1 %v3479_v34 }
 0x75a   :  { %3482 = vmatpush3.bf16.msra.mxu1 %v3479_v34  ;;  %v3300_v54 = vpop.f32.mrb[28].mxu0 }
 0x75b   :  { %3492 = vmatprep.subr.bf16.mxu1 %v3491_v37  ;;  %v2659_v45 = vpop.f32.mrb[29].mxu0 }
 0x75d   :  { %3288 = vmatmul.mubr.msk.f32.vlgmr.msra.gmra.mrb[18].mxu1 %vm280_vm7, %v3278_v48 }
 0x75e   :  { %3494 = vmatpush3.bf16.msra.mxu1 %v3491_v37  ;;  %3309 = vmatprep.mubr.msk.f32.mxu1 %vm280_vm7, %v2659_v45 }
 0x75f   :  { %3496 = vmatprep.subr.bf16.mxu1 %v3495_v44 }
 0x762   :  { %3498 = vmatpush3.bf16.msra.mxu1 %v3495_v44 }
 0x765   :  { %3310 = vmatmul.mubr.msk.f32.vlgmr.msra.gmra.mrb[18].mxu1 %vm280_vm7, %v3300_v54 }
 0x838   :  { %v3311_v49 = vpop.f32.mrb[18].mxu1 }
 0x839   :  { %v2757_v41 = vmul.f32 %v4266_v17, %v3311_v49  ;;  %v2745_v52 = vpop.f32.mrb[19].mxu1 }
 0x83a   :  { %v2756_v3 = vmul.f32 %v4271_v61, %v2745_v52 }
 0x83b   :  { %v2759_v4 = vadd.f32 %v2757_v41, %v2022_v51 }
 0x83c   :  { %v2758_v5 = vadd.f32 %v2756_v3, %v2017_v63 }
 0x83d   :  { %2761 = vst.msk [vmem:[#allocation14 + $0x8] sm:$0xff] %vm280_vm7, %v2759_v4 }
 0x83e   :  { %2760 = vst.msk [vmem:[#allocation14] sm:$0xff] %vm280_vm7, %v2758_v5 }
 0x83f   :  { %3731 = shalt.err (!%p3728_p4)
}
 0x840   :  { %s3732_s5 = scalar_lea.hbm %s4421_s21, 256 }
 0x841   :  { %p3733_p5 = scmp.ne.s32.totalorder %s4421_s21, %s3732_s5  ;;  %p3736_p6 = scmp.lt.u32.totalorder %s3732_s5, %s4421_s21 }
 0x843   :  { %p3738_p7 = pnand %p3736_p6, %p3733_p5 }
 0x845   :  { %3741 = shalt.err (!%p3738_p7)
}
 0x846   :  { %2773 = dma.vmem_to_hbm [thread:$0]  %s2768_s11, 256, %s4421_s21, [#allocation4], %s3754_s23, %s3754_s23, %s3755_s1  }
 0x847   :  { %3750 = dma.done.wait [#allocation4], 256  }
 0x848   :  { %3751 = vsyncadd [#allocation4], 4294967040 }
 0x849   :  { %2777 = vsyncpa [#allocation3], 1 }
 0x84a   :  { %2778 = vsyncpa [#allocation6], 1 }
 0x84b   :  { %2779 = vsyncpa [#allocation9], 1 }
 0x84c   :  { %2780 = vsyncpa [#allocation12], 1 }
 0x84d   :  { %2781 = vsyncpa [#allocation4], 1 }

</bundles_post_ra>
